<compile_context>
chip_gen: v7x
topology: tpu7x:2x2x1
jax: 0.10.0
libtpu: 0.0.40
codegen_flags: <defaults>
</compile_context>

<pallas_src>
import math
import functools

import jax
import jax.numpy as jnp
from jax.experimental import pallas as pl
from jax.experimental.pallas import tpu as pltpu


# ----------------------------------------------------------------------------- kernel
def _encoder_layer_kernel(eps, scale, nhead, hd, ff_chunk,
                          x_ref, pe_ref, wqkv_ref, bqkv_ref, wo_ref,
                          w1_ref, b1_ref, w2_ref, pvec_ref,
                          out_ref):
    G, D, T = x_ref.shape                     # one batch-group per grid step (G == B by default)
    M = G * T
    n_chunks = w1_ref.shape[0]

    # ---- in-kernel input permute [G, D, T] -> [G, T, D] (XLU) + positional encoding ----------
    x3 = jnp.transpose(x_ref[...].astype(jnp.float32), (0, 2, 1))
    x = (x3 + pe_ref[...].astype(jnp.float32)[None]).reshape(M, D)       # f32 residual copy
    xb = x.astype(jnp.bfloat16)                                          # bf16 MXU operand

    # ---- fused QKV projection: one [M, D] @ [D, 3D] matmul for all heads ---------------------
    qkv = jnp.dot(xb, wqkv_ref[...], preferred_element_type=jnp.float32) + bqkv_ref[...]

    # ---- per-head attention (nhead tiny & static -> unrolled); lane-slice the [M, 3D] slab ----
    heads = []
    for h in range(nhead):
        lo = h * hd
        qh = (qkv[:, lo:lo + hd] * scale).reshape(G, T, hd)
        kh = qkv[:, D + lo:D + lo + hd].reshape(G, T, hd)
        vh = qkv[:, 2 * D + lo:2 * D + lo + hd].reshape(G, T, hd)
        s = jnp.einsum('gqd,gkd->gqk', qh, kh, preferred_element_type=jnp.float32)   # [G, T, T]
        s = s - jnp.max(s, axis=-1, keepdims=True)
        p = jnp.exp(s)
        p = p * pl.reciprocal(jnp.sum(p, axis=-1, keepdims=True), approx=True)
        oh = jnp.einsum('gqk,gkd->gqd', p, vh, preferred_element_type=jnp.float32)    # [G, T, hd]
        heads.append(oh.reshape(M, hd))

    # heads concatenated (63 lanes, single vreg column) -> one output-projection matmul
    o_all = jnp.concatenate(heads, axis=-1)                               # [M, D]
    attn = jnp.dot(o_all.astype(jnp.bfloat16), wo_ref[...],
                   preferred_element_type=jnp.float32) + pvec_ref[0:1, :]            # + bo

    # ---- residual + LayerNorm1 (f32; dropout == identity, eval mode) --------------------------
    y = x + attn
    mu = jnp.mean(y, axis=-1, keepdims=True)
    var = jnp.mean((y - mu) ** 2, axis=-1, keepdims=True)
    y = (y - mu) * jax.lax.rsqrt(var + eps) * pvec_ref[2:3, :] + pvec_ref[3:4, :]

    # ---- feed-forward, chunked over dff (bf16 operands, f32 accumulation) ---------------------
    yb = y.astype(jnp.bfloat16)
    ff = jnp.zeros((M, D), jnp.float32)
    for c in range(n_chunks):                  # static unrolled; b1 sliced at lane-aligned offsets
        h1 = jnp.dot(yb, w1_ref[c], preferred_element_type=jnp.float32) \
             + b1_ref[:, c * ff_chunk:(c + 1) * ff_chunk]
        h1 = jnp.maximum(h1, 0.0)
        ff = ff + jnp.dot(h1.astype(jnp.bfloat16), w2_ref[c],
                          preferred_element_type=jnp.float32)
    ff = ff + pvec_ref[1:2, :]                                                        # + b2

    # ---- residual + LayerNorm2 (f32) ----------------------------------------------------------
    z = y + ff
    mu2 = jnp.mean(z, axis=-1, keepdims=True)
    var2 = jnp.mean((z - mu2) ** 2, axis=-1, keepdims=True)
    z = (z - mu2) * jax.lax.rsqrt(var2 + eps) * pvec_ref[4:5, :] + pvec_ref[5:6, :]

    # ---- in-kernel output permute back to the PyTorch layout: [G, T, D] -> [G, D, T] ----------
    out_ref[...] = jnp.transpose(z.reshape(G, T, D), (0, 2, 1)).astype(out_ref.dtype)


# ----------------------------------------------------------------------------- glue
def positional_encoding(seq_len, d_model):
    """Replicates the (odd-d_model) PyTorch PositionalEncoding buffer, truncated to seq_len."""
    position = jnp.arange(seq_len, dtype=jnp.float32)[:, None]                        # [T, 1]
    div_term = jnp.exp(jnp.arange(0, d_model + 1, 2, dtype=jnp.float32)
                       * (-math.log(10000.0) / d_model))
    pe = jnp.zeros((seq_len, d_model), dtype=jnp.float32)
    pe = pe.at[:, 0::2].set(jnp.sin(position * div_term[: d_model // 2 + 1]))
    pe = pe.at[:, 1::2].set(jnp.cos(position * div_term[: d_model // 2]))
    return pe


def init_params(key, d_model, dim_ff=2048):
    """Deterministic PyTorch-style uniform(-1/sqrt(fan_in), 1/sqrt(fan_in)) init."""
    ks = jax.random.split(key, 8)

    def u(k, shape, fan_in):
        b = 1.0 / math.sqrt(fan_in)
        return jax.random.uniform(k, shape, jnp.float32, -b, b)

    return dict(
        wqkv=u(ks[0], (3 * d_model, d_model), d_model),
        bqkv=u(ks[1], (1, 3 * d_model), d_model),
        wo=u(ks[2], (d_model, d_model), d_model),
        bo=u(ks[3], (1, d_model), d_model),
        w1=u(ks[4], (dim_ff, d_model), d_model),
        b1=u(ks[5], (1, dim_ff), d_model),
        w2=u(ks[6], (d_model, dim_ff), dim_ff),
        b2=u(ks[7], (1, d_model), dim_ff),
        g1=jnp.ones((1, d_model), jnp.float32),
        be1=jnp.zeros((1, d_model), jnp.float32),
        g2=jnp.ones((1, d_model), jnp.float32),
        be2=jnp.zeros((1, d_model), jnp.float32),
    )


@functools.partial(jax.jit, static_argnames=("nhead", "num_groups", "ff_chunk"))
def eeg_attention_forward(src, params, nhead, num_groups=1, ff_chunk=1024):
    """src: [B, C, T] with d_model == C. Returns [B, C, T] (matches output.permute(1,2,0))."""
    B, D, T = src.shape
    dff = params["w1"].shape[0]
    hd = D // nhead
    assert nhead * hd == D, "d_model must be divisible by nhead"

    # num_groups=1: batch folded into M, single grid step (best on single-TC v5e/v6e).
    # On v7x, num_groups=2 splits batch across the two TensorCores — keep only if measured faster.
    if B % num_groups != 0:
        num_groups = 1
    G = B // num_groups

    if dff % ff_chunk != 0:
        ff_chunk = dff
    n_chunks = dff // ff_chunk

    # ------- activations / PE (f32: residual + LN path stays f32) -------------------------
    pe = positional_encoding(T, D)                                     # [T, D]

    # ------- weights: pre-transpose, pre-split, cast matmul operands to bf16 --------------
    # (In production these would be prepared once; here they are tiny XLA ops per call.)
    wqkv_t = params["wqkv"].astype(jnp.bfloat16).T                     # [D, 3D]  (q|k|v columns)
    bqkv = params["bqkv"].astype(jnp.float32)                          # [1, 3D]
    wo_t = params["wo"].astype(jnp.bfloat16).T                         # [D, D]   (rows = concat heads)

    w1c = params["w1"].astype(jnp.bfloat16).T.reshape(D, n_chunks, ff_chunk).transpose(1, 0, 2)
    b1 = params["b1"].astype(jnp.float32)                              # [1, dff]
    w2c = params["w2"].astype(jnp.bfloat16).T.reshape(n_chunks, ff_chunk, D)

    # pack the nine tiny [1, D] vectors into one array: rows = bo, b2, g1, be1, g2, be2
    pvec = jnp.concatenate([params["bo"], params["b2"], params["g1"],
                            params["be1"], params["g2"], params["be2"]],
                           axis=0).astype(jnp.float32)                 # [6, D]

    def full(shape):
        nd = len(shape)
        return pl.BlockSpec(shape, lambda g, nd=nd: (0,) * nd)

    scale = 1.0 / math.sqrt(hd)

    out = pl.pallas_call(
        functools.partial(_encoder_layer_kernel, 1e-5, scale, nhead, hd, ff_chunk),
        out_shape=jax.ShapeDtypeStruct((B, D, T), jnp.float32),
        grid=(num_groups,),
        in_specs=[
            pl.BlockSpec((G, D, T), lambda g: (g, 0, 0)),              # x (batch group, [G, D, T])
            full((T, D)),                                              # pe
            full((D, 3 * D)),                                          # fused QKV weight (bf16)
            full((1, 3 * D)),                                          # fused QKV bias
            full((D, D)),                                              # output projection (bf16)
            full((n_chunks, D, ff_chunk)),                             # W1 chunks (bf16)
            full((1, dff)),                                            # b1
            full((n_chunks, ff_chunk, D)),                             # W2 chunks (bf16)
            full((6, D)),                                              # packed bo/b2/g1/be1/g2/be2
        ],
        out_specs=pl.BlockSpec((G, D, T), lambda g: (g, 0, 0)),
        compiler_params=pltpu.CompilerParams(dimension_semantics=("parallel",)),
    )(src.astype(jnp.float32), pe, wqkv_t, bqkv, wo_t, w1c, b1, w2c, pvec)

    return out                                                         # already [B, D, T]


# ----------------------------------------------------------------------------- pure-JAX reference
def _layer_norm(x, g, b, eps):
    mu = jnp.mean(x, axis=-1, keepdims=True)
    var = jnp.mean((x - mu) ** 2, axis=-1, keepdims=True)
    return (x - mu) * jax.lax.rsqrt(var + eps) * g + b


def eeg_attention_reference(src, params, nhead):
    B, D, T = src.shape
    hd = D // nhead
    scale = 1.0 / math.sqrt(hd)
    x = jnp.transpose(src, (0, 2, 1)).astype(jnp.float32) + positional_encoding(T, D)[None]
    qkv = x @ params["wqkv"].T + params["bqkv"][0]                     # [B, T, 3D]
    q, k, v = qkv[..., :D] * scale, qkv[..., D:2 * D], qkv[..., 2 * D:]

    def split(t):                                                      # [B, T, D] -> [B, H, T, hd]
        return t.reshape(B, T, nhead, hd).transpose(0, 2, 1, 3)

    q, k, v = split(q), split(k), split(v)
    s = jnp.einsum('bhqd,bhkd->bhqk', q, k)
    p = jax.nn.softmax(s, axis=-1)
    o = jnp.einsum('bhqk,bhkd->bhqd', p, v).transpose(0, 2, 1, 3).reshape(B, T, D)
    attn = o @ params["wo"].T + params["bo"][0]
    y = _layer_norm(x + attn, params["g1"][0], params["be1"][0], 1e-5)
    h1 = jax.nn.relu(y @ params["w1"].T + params["b1"][0])
    ff = h1 @ params["w2"].T + params["b2"][0]
    z = _layer_norm(y + ff, params["g2"][0], params["be2"][0], 1e-5)
    return jnp.transpose(z, (0, 2, 1))


# ----------------------------------------------------------------------------- main
if __name__ == "__main__":
    # NOTE: the reference PositionalEncoding only runs for odd d_model; pick d_model=21, nhead=3.
    B, C, T = 2, 21, 16          # src: [batch, channel(=d_model), time]
    NHEAD = 3

    key = jax.random.PRNGKey(0)
    k_src, k_par = jax.random.split(key)
    src = jax.random.normal(k_src, (B, C, T), dtype=jnp.float32)
    params = init_params(k_par, C)

    out = eeg_attention_forward(src, params, NHEAD)
    jax.block_until_ready(out)
    assert out.shape == (B, C, T), out.shape
    assert bool(jnp.all(jnp.isfinite(out)))

    ref = eeg_attention_reference(src, params, NHEAD)
    err = float(jnp.max(jnp.abs(out - ref)))
    # bf16 matmul operands (f32 accumulation) + approx reciprocal vs a pure-f32 reference.
    assert err < 3e-2, f"max |kernel - reference| = {err}"
    # TODO(synk): dropout layers of TransformerEncoderLayer are treated as identity (eval mode).
    print("KERNEL_OK")
</pallas_src>

<mosaic_0001>
module attributes {stable_mosaic.version = 11 : i64} {
  func.func @_encoder_layer_kernel(%arg0: i32, %arg1: memref<2x21x16xf32, #tpu.memory_space<vmem>>, %arg2: memref<16x21xf32, #tpu.memory_space<vmem>>, %arg3: memref<21x63xbf16, #tpu.memory_space<vmem>>, %arg4: memref<1x63xf32, #tpu.memory_space<vmem>>, %arg5: memref<21x21xbf16, #tpu.memory_space<vmem>>, %arg6: memref<2x21x1024xbf16, #tpu.memory_space<vmem>>, %arg7: memref<1x2048xf32, #tpu.memory_space<vmem>>, %arg8: memref<2x1024x21xbf16, #tpu.memory_space<vmem>>, %arg9: memref<6x21xf32, #tpu.memory_space<vmem>>, %arg10: memref<2x21x16xf32, #tpu.memory_space<vmem>>) attributes {dimension_semantics = [#tpu.dimension_semantics<parallel>], iteration_bounds = array<i64: 1>, scalar_prefetch = 0 : i64, scratch_operands = 0 : i64, tpu.core_type = #tpu.core_type<tc>, window_params = [{transform_indices = @transform_0, window_bounds = array<i64: 2, 21, 16>}, {pipeline_mode = #tpu.pipeline_mode<synchronous>, transform_indices = @transform_1, window_bounds = array<i64: 16, 21>}, {pipeline_mode = #tpu.pipeline_mode<synchronous>, transform_indices = @transform_2, window_bounds = array<i64: 21, 63>}, {pipeline_mode = #tpu.pipeline_mode<synchronous>, transform_indices = @transform_3, window_bounds = array<i64: 1, 63>}, {pipeline_mode = #tpu.pipeline_mode<synchronous>, transform_indices = @transform_4, window_bounds = array<i64: 21, 21>}, {pipeline_mode = #tpu.pipeline_mode<synchronous>, transform_indices = @transform_5, window_bounds = array<i64: 2, 21, 1024>}, {pipeline_mode = #tpu.pipeline_mode<synchronous>, transform_indices = @transform_6, window_bounds = array<i64: 1, 2048>}, {pipeline_mode = #tpu.pipeline_mode<synchronous>, transform_indices = @transform_7, window_bounds = array<i64: 2, 1024, 21>}, {pipeline_mode = #tpu.pipeline_mode<synchronous>, transform_indices = @transform_8, window_bounds = array<i64: 6, 21>}, {transform_indices = @transform_9, window_bounds = array<i64: 2, 21, 16>}]} {
    %c0 = arith.constant 0 : index
    %c0_0 = arith.constant 0 : index
    %c0_1 = arith.constant 0 : index
    %0 = vector.load %arg1[%c0, %c0_0, %c0_1] : memref<2x21x16xf32, #tpu.memory_space<vmem>>, vector<2x21x16xf32>
    %1 = tpu.transpose %0, [0, 2, 1] : vector<2x21x16xf32> -> vector<2x16x21xf32>
    %c0_2 = arith.constant 0 : index
    %c0_3 = arith.constant 0 : index
    %2 = vector.load %arg2[%c0_2, %c0_3] : memref<16x21xf32, #tpu.memory_space<vmem>>, vector<16x21xf32>
    %3 = vector.shape_cast %2 : vector<16x21xf32> to vector<1x16x21xf32>
    %4 = vector.broadcast %3 : vector<1x16x21xf32> to vector<2x16x21xf32>
    %5 = arith.addf %1, %4 : vector<2x16x21xf32>
    %6 = vector.shape_cast %5 : vector<2x16x21xf32> to vector<32x21xf32>
    %7 = arith.truncf %6 : vector<32x21xf32> to vector<32x21xbf16>
    %c0_4 = arith.constant 0 : index
    %c0_5 = arith.constant 0 : index
    %8 = vector.load %arg3[%c0_4, %c0_5] : memref<21x63xbf16, #tpu.memory_space<vmem>>, vector<21x63xbf16>
    %cst = arith.constant dense<0.000000e+00> : vector<32x63xf32>
    %9 = tpu.matmul %7, %8, %cst {dimension_numbers = #tpu.dot_dimension_numbers<[1], [0], [0], [1], [0, 0, 1, 1], [], []>} : vector<32x21xbf16>, vector<21x63xbf16>, vector<32x63xf32> -> vector<32x63xf32>
    %c0_6 = arith.constant 0 : index
    %c0_7 = arith.constant 0 : index
    %10 = vector.load %arg4[%c0_6, %c0_7] : memref<1x63xf32, #tpu.memory_space<vmem>>, vector<1x63xf32>
    %11 = vector.broadcast %10 : vector<1x63xf32> to vector<32x63xf32>
    %12 = arith.addf %9, %11 : vector<32x63xf32>
    %13 = vector.extract_strided_slice %12 {offsets = [0, 0], sizes = [32, 7], strides = [1, 1]} : vector<32x63xf32> to vector<32x7xf32>
    %cst_8 = arith.constant 0.377964467 : f32
    %14 = vector.broadcast %cst_8 : f32 to vector<32x7xf32>
    %15 = arith.mulf %13, %14 : vector<32x7xf32>
    %16 = vector.shape_cast %15 : vector<32x7xf32> to vector<2x16x7xf32>
    %17 = vector.extract_strided_slice %12 {offsets = [0, 21], sizes = [32, 7], strides = [1, 1]} : vector<32x63xf32> to vector<32x7xf32>
    %18 = vector.shape_cast %17 : vector<32x7xf32> to vector<2x16x7xf32>
    %19 = vector.extract_strided_slice %12 {offsets = [0, 42], sizes = [32, 7], strides = [1, 1]} : vector<32x63xf32> to vector<32x7xf32>
    %20 = vector.shape_cast %19 : vector<32x7xf32> to vector<2x16x7xf32>
    "tpu.trace_start"() <{level = 10 : i32, message = "gqd,gkd->gqk"}> : () -> ()
    %cst_9 = arith.constant dense<0.000000e+00> : vector<2x16x16xf32>
    %21 = tpu.matmul %16, %18, %cst_9 {dimension_numbers = #tpu.dot_dimension_numbers<[2], [2], [1], [1], [0, 0, 0, 1, 1, 1], [0], [0]>} : vector<2x16x7xf32>, vector<2x16x7xf32>, vector<2x16x16xf32> -> vector<2x16x16xf32>
    "tpu.trace_stop"() : () -> ()
    %cst_10 = arith.constant dense<0xFF800000> : vector<2x16xf32>
    %22 = vector.multi_reduction <maximumf>, %21, %cst_10 [2] : vector<2x16x16xf32> to vector<2x16xf32>
    %23 = vector.shape_cast %22 : vector<2x16xf32> to vector<2x16x1xf32>
    %24 = vector.broadcast %23 : vector<2x16x1xf32> to vector<2x16x16xf32>
    %25 = arith.subf %21, %24 : vector<2x16x16xf32>
    %26 = math.exp %25 : vector<2x16x16xf32>
    %cst_11 = arith.constant dense<0.000000e+00> : vector<2x16xf32>
    %27 = vector.multi_reduction <add>, %26, %cst_11 [2] : vector<2x16x16xf32> to vector<2x16xf32>
    %28 = vector.shape_cast %27 : vector<2x16xf32> to vector<2x16x1xf32>
    %29 = tpu.reciprocal %28 {approx = true} : vector<2x16x1xf32> -> vector<2x16x1xf32>
    %30 = vector.broadcast %29 : vector<2x16x1xf32> to vector<2x16x16xf32>
    %31 = arith.mulf %26, %30 : vector<2x16x16xf32>
    "tpu.trace_start"() <{level = 10 : i32, message = "gqk,gkd->gqd"}> : () -> ()
    %cst_12 = arith.constant dense<0.000000e+00> : vector<2x16x7xf32>
    %32 = tpu.matmul %31, %20, %cst_12 {dimension_numbers = #tpu.dot_dimension_numbers<[2], [1], [1], [2], [0, 0, 0, 1, 1, 2], [0], [0]>} : vector<2x16x16xf32>, vector<2x16x7xf32>, vector<2x16x7xf32> -> vector<2x16x7xf32>
    "tpu.trace_stop"() : () -> ()
    %33 = vector.shape_cast %32 : vector<2x16x7xf32> to vector<32x7xf32>
    %34 = vector.extract_strided_slice %12 {offsets = [0, 7], sizes = [32, 7], strides = [1, 1]} : vector<32x63xf32> to vector<32x7xf32>
    %cst_13 = arith.constant 0.377964467 : f32
    %35 = vector.broadcast %cst_13 : f32 to vector<32x7xf32>
    %36 = arith.mulf %34, %35 : vector<32x7xf32>
    %37 = vector.shape_cast %36 : vector<32x7xf32> to vector<2x16x7xf32>
    %38 = vector.extract_strided_slice %12 {offsets = [0, 28], sizes = [32, 7], strides = [1, 1]} : vector<32x63xf32> to vector<32x7xf32>
    %39 = vector.shape_cast %38 : vector<32x7xf32> to vector<2x16x7xf32>
    %40 = vector.extract_strided_slice %12 {offsets = [0, 49], sizes = [32, 7], strides = [1, 1]} : vector<32x63xf32> to vector<32x7xf32>
    %41 = vector.shape_cast %40 : vector<32x7xf32> to vector<2x16x7xf32>
    "tpu.trace_start"() <{level = 10 : i32, message = "gqd,gkd->gqk"}> : () -> ()
    %cst_14 = arith.constant dense<0.000000e+00> : vector<2x16x16xf32>
    %42 = tpu.matmul %37, %39, %cst_14 {dimension_numbers = #tpu.dot_dimension_numbers<[2], [2], [1], [1], [0, 0, 0, 1, 1, 1], [0], [0]>} : vector<2x16x7xf32>, vector<2x16x7xf32>, vector<2x16x16xf32> -> vector<2x16x16xf32>
    "tpu.trace_stop"() : () -> ()
    %cst_15 = arith.constant dense<0xFF800000> : vector<2x16xf32>
    %43 = vector.multi_reduction <maximumf>, %42, %cst_15 [2] : vector<2x16x16xf32> to vector<2x16xf32>
    %44 = vector.shape_cast %43 : vector<2x16xf32> to vector<2x16x1xf32>
    %45 = vector.broadcast %44 : vector<2x16x1xf32> to vector<2x16x16xf32>
    %46 = arith.subf %42, %45 : vector<2x16x16xf32>
    %47 = math.exp %46 : vector<2x16x16xf32>
    %cst_16 = arith.constant dense<0.000000e+00> : vector<2x16xf32>
    %48 = vector.multi_reduction <add>, %47, %cst_16 [2] : vector<2x16x16xf32> to vector<2x16xf32>
    %49 = vector.shape_cast %48 : vector<2x16xf32> to vector<2x16x1xf32>
    %50 = tpu.reciprocal %49 {approx = true} : vector<2x16x1xf32> -> vector<2x16x1xf32>
    %51 = vector.broadcast %50 : vector<2x16x1xf32> to vector<2x16x16xf32>
    %52 = arith.mulf %47, %51 : vector<2x16x16xf32>
    "tpu.trace_start"() <{level = 10 : i32, message = "gqk,gkd->gqd"}> : () -> ()
    %cst_17 = arith.constant dense<0.000000e+00> : vector<2x16x7xf32>
    %53 = tpu.matmul %52, %41, %cst_17 {dimension_numbers = #tpu.dot_dimension_numbers<[2], [1], [1], [2], [0, 0, 0, 1, 1, 2], [0], [0]>} : vector<2x16x16xf32>, vector<2x16x7xf32>, vector<2x16x7xf32> -> vector<2x16x7xf32>
    "tpu.trace_stop"() : () -> ()
    %54 = vector.shape_cast %53 : vector<2x16x7xf32> to vector<32x7xf32>
    %55 = vector.extract_strided_slice %12 {offsets = [0, 14], sizes = [32, 7], strides = [1, 1]} : vector<32x63xf32> to vector<32x7xf32>
    %cst_18 = arith.constant 0.377964467 : f32
    %56 = vector.broadcast %cst_18 : f32 to vector<32x7xf32>
    %57 = arith.mulf %55, %56 : vector<32x7xf32>
    %58 = vector.shape_cast %57 : vector<32x7xf32> to vector<2x16x7xf32>
    %59 = vector.extract_strided_slice %12 {offsets = [0, 35], sizes = [32, 7], strides = [1, 1]} : vector<32x63xf32> to vector<32x7xf32>
    %60 = vector.shape_cast %59 : vector<32x7xf32> to vector<2x16x7xf32>
    %61 = vector.extract_strided_slice %12 {offsets = [0, 56], sizes = [32, 7], strides = [1, 1]} : vector<32x63xf32> to vector<32x7xf32>
    %62 = vector.shape_cast %61 : vector<32x7xf32> to vector<2x16x7xf32>
    "tpu.trace_start"() <{level = 10 : i32, message = "gqd,gkd->gqk"}> : () -> ()
    %cst_19 = arith.constant dense<0.000000e+00> : vector<2x16x16xf32>
    %63 = tpu.matmul %58, %60, %cst_19 {dimension_numbers = #tpu.dot_dimension_numbers<[2], [2], [1], [1], [0, 0, 0, 1, 1, 1], [0], [0]>} : vector<2x16x7xf32>, vector<2x16x7xf32>, vector<2x16x16xf32> -> vector<2x16x16xf32>
    "tpu.trace_stop"() : () -> ()
    %cst_20 = arith.constant dense<0xFF800000> : vector<2x16xf32>
    %64 = vector.multi_reduction <maximumf>, %63, %cst_20 [2] : vector<2x16x16xf32> to vector<2x16xf32>
    %65 = vector.shape_cast %64 : vector<2x16xf32> to vector<2x16x1xf32>
    %66 = vector.broadcast %65 : vector<2x16x1xf32> to vector<2x16x16xf32>
    %67 = arith.subf %63, %66 : vector<2x16x16xf32>
    %68 = math.exp %67 : vector<2x16x16xf32>
    %cst_21 = arith.constant dense<0.000000e+00> : vector<2x16xf32>
    %69 = vector.multi_reduction <add>, %68, %cst_21 [2] : vector<2x16x16xf32> to vector<2x16xf32>
    %70 = vector.shape_cast %69 : vector<2x16xf32> to vector<2x16x1xf32>
    %71 = tpu.reciprocal %70 {approx = true} : vector<2x16x1xf32> -> vector<2x16x1xf32>
    %72 = vector.broadcast %71 : vector<2x16x1xf32> to vector<2x16x16xf32>
    %73 = arith.mulf %68, %72 : vector<2x16x16xf32>
    "tpu.trace_start"() <{level = 10 : i32, message = "gqk,gkd->gqd"}> : () -> ()
    %cst_22 = arith.constant dense<0.000000e+00> : vector<2x16x7xf32>
    %74 = tpu.matmul %73, %62, %cst_22 {dimension_numbers = #tpu.dot_dimension_numbers<[2], [1], [1], [2], [0, 0, 0, 1, 1, 2], [0], [0]>} : vector<2x16x16xf32>, vector<2x16x7xf32>, vector<2x16x7xf32> -> vector<2x16x7xf32>
    "tpu.trace_stop"() : () -> ()
    %75 = vector.shape_cast %74 : vector<2x16x7xf32> to vector<32x7xf32>
    %76 = tpu.concatenate %33, %54, %75 in 1 : vector<32x7xf32>, vector<32x7xf32>, vector<32x7xf32> -> vector<32x21xf32>
    %77 = arith.truncf %76 : vector<32x21xf32> to vector<32x21xbf16>
    %c0_23 = arith.constant 0 : index
    %c0_24 = arith.constant 0 : index
    %78 = vector.load %arg5[%c0_23, %c0_24] : memref<21x21xbf16, #tpu.memory_space<vmem>>, vector<21x21xbf16>
    %cst_25 = arith.constant dense<0.000000e+00> : vector<32x21xf32>
    %79 = tpu.matmul %77, %78, %cst_25 {dimension_numbers = #tpu.dot_dimension_numbers<[1], [0], [0], [1], [0, 0, 1, 1], [], []>} : vector<32x21xbf16>, vector<21x21xbf16>, vector<32x21xf32> -> vector<32x21xf32>
    %c0_26 = arith.constant 0 : index
    %c0_27 = arith.constant 0 : index
    %80 = vector.load %arg9[%c0_26, %c0_27] : memref<6x21xf32, #tpu.memory_space<vmem>>, vector<1x21xf32>
    %81 = vector.broadcast %80 : vector<1x21xf32> to vector<32x21xf32>
    %82 = arith.addf %79, %81 : vector<32x21xf32>
    %83 = arith.addf %6, %82 : vector<32x21xf32>
    %cst_28 = arith.constant dense<0.000000e+00> : vector<32xf32>
    %84 = vector.multi_reduction <add>, %83, %cst_28 [1] : vector<32x21xf32> to vector<32xf32>
    %85 = vector.shape_cast %84 : vector<32xf32> to vector<32x1xf32>
    %cst_29 = arith.constant 2.100000e+01 : f32
    %86 = vector.broadcast %cst_29 : f32 to vector<32x1xf32>
    %87 = arith.divf %85, %86 : vector<32x1xf32>
    %88 = vector.broadcast %87 : vector<32x1xf32> to vector<32x21xf32>
    %89 = arith.subf %83, %88 : vector<32x21xf32>
    %90 = arith.mulf %89, %89 : vector<32x21xf32>
    %cst_30 = arith.constant dense<0.000000e+00> : vector<32xf32>
    %91 = vector.multi_reduction <add>, %90, %cst_30 [1] : vector<32x21xf32> to vector<32xf32>
    %92 = vector.shape_cast %91 : vector<32xf32> to vector<32x1xf32>
    %cst_31 = arith.constant 2.100000e+01 : f32
    %93 = vector.broadcast %cst_31 : f32 to vector<32x1xf32>
    %94 = arith.divf %92, %93 : vector<32x1xf32>
    %95 = vector.broadcast %87 : vector<32x1xf32> to vector<32x21xf32>
    %96 = arith.subf %83, %95 : vector<32x21xf32>
    %cst_32 = arith.constant 9.99999974E-6 : f32
    %97 = vector.broadcast %cst_32 : f32 to vector<32x1xf32>
    %98 = arith.addf %94, %97 : vector<32x1xf32>
    %99 = math.rsqrt %98 : vector<32x1xf32>
    %100 = vector.broadcast %99 : vector<32x1xf32> to vector<32x21xf32>
    %101 = arith.mulf %96, %100 : vector<32x21xf32>
    %c2 = arith.constant 2 : index
    %c0_33 = arith.constant 0 : index
    %102 = vector.load %arg9[%c2, %c0_33] : memref<6x21xf32, #tpu.memory_space<vmem>>, vector<1x21xf32>
    %103 = vector.broadcast %102 : vector<1x21xf32> to vector<32x21xf32>
    %104 = arith.mulf %101, %103 : vector<32x21xf32>
    %c3 = arith.constant 3 : index
    %c0_34 = arith.constant 0 : index
    %105 = vector.load %arg9[%c3, %c0_34] : memref<6x21xf32, #tpu.memory_space<vmem>>, vector<1x21xf32>
    %106 = vector.broadcast %105 : vector<1x21xf32> to vector<32x21xf32>
    %107 = arith.addf %104, %106 : vector<32x21xf32>
    %108 = arith.truncf %107 : vector<32x21xf32> to vector<32x21xbf16>
    %cst_35 = arith.constant 0.000000e+00 : f32
    %109 = vector.broadcast %cst_35 : f32 to vector<32x21xf32>
    %c0_36 = arith.constant 0 : index
    %c0_37 = arith.constant 0 : index
    %c0_38 = arith.constant 0 : index
    %110 = vector.load %arg6[%c0_36, %c0_37, %c0_38] : memref<2x21x1024xbf16, #tpu.memory_space<vmem>>, vector<1x21x1024xbf16>
    %111 = vector.shape_cast %110 : vector<1x21x1024xbf16> to vector<21x1024xbf16>
    %cst_39 = arith.constant dense<0.000000e+00> : vector<32x1024xf32>
    %112 = tpu.matmul %108, %111, %cst_39 {dimension_numbers = #tpu.dot_dimension_numbers<[1], [0], [0], [1], [0, 0, 1, 1], [], []>} : vector<32x21xbf16>, vector<21x1024xbf16>, vector<32x1024xf32> -> vector<32x1024xf32>
    %c0_40 = arith.constant 0 : index
    %c0_41 = arith.constant 0 : index
    %113 = vector.load %arg7[%c0_40, %c0_41] : memref<1x2048xf32, #tpu.memory_space<vmem>>, vector<1x1024xf32>
    %114 = vector.broadcast %113 : vector<1x1024xf32> to vector<32x1024xf32>
    %115 = arith.addf %112, %114 : vector<32x1024xf32>
    %cst_42 = arith.constant 0.000000e+00 : f32
    %116 = vector.broadcast %cst_42 : f32 to vector<32x1024xf32>
    %117 = arith.maximumf %115, %116 : vector<32x1024xf32>
    %118 = arith.truncf %117 : vector<32x1024xf32> to vector<32x1024xbf16>
    %c0_43 = arith.constant 0 : index
    %c0_44 = arith.constant 0 : index
    %c0_45 = arith.constant 0 : index
    %119 = vector.load %arg8[%c0_43, %c0_44, %c0_45] : memref<2x1024x21xbf16, #tpu.memory_space<vmem>>, vector<1x1024x21xbf16>
    %120 = vector.shape_cast %119 : vector<1x1024x21xbf16> to vector<1024x21xbf16>
    %cst_46 = arith.constant dense<0.000000e+00> : vector<32x21xf32>
    %121 = tpu.matmul %118, %120, %cst_46 {dimension_numbers = #tpu.dot_dimension_numbers<[1], [0], [0], [1], [0, 0, 1, 1], [], []>} : vector<32x1024xbf16>, vector<1024x21xbf16>, vector<32x21xf32> -> vector<32x21xf32>
    %122 = arith.addf %109, %121 : vector<32x21xf32>
    %c1 = arith.constant 1 : index
    %c0_47 = arith.constant 0 : index
    %c0_48 = arith.constant 0 : index
    %123 = vector.load %arg6[%c1, %c0_47, %c0_48] : memref<2x21x1024xbf16, #tpu.memory_space<vmem>>, vector<1x21x1024xbf16>
    %124 = vector.shape_cast %123 : vector<1x21x1024xbf16> to vector<21x1024xbf16>
    %cst_49 = arith.constant dense<0.000000e+00> : vector<32x1024xf32>
    %125 = tpu.matmul %108, %124, %cst_49 {dimension_numbers = #tpu.dot_dimension_numbers<[1], [0], [0], [1], [0, 0, 1, 1], [], []>} : vector<32x21xbf16>, vector<21x1024xbf16>, vector<32x1024xf32> -> vector<32x1024xf32>
    %c0_50 = arith.constant 0 : index
    %c1024 = arith.constant 1024 : index
    %126 = vector.load %arg7[%c0_50, %c1024] : memref<1x2048xf32, #tpu.memory_space<vmem>>, vector<1x1024xf32>
    %127 = vector.broadcast %126 : vector<1x1024xf32> to vector<32x1024xf32>
    %128 = arith.addf %125, %127 : vector<32x1024xf32>
    %cst_51 = arith.constant 0.000000e+00 : f32
    %129 = vector.broadcast %cst_51 : f32 to vector<32x1024xf32>
    %130 = arith.maximumf %128, %129 : vector<32x1024xf32>
    %131 = arith.truncf %130 : vector<32x1024xf32> to vector<32x1024xbf16>
    %c1_52 = arith.constant 1 : index
    %c0_53 = arith.constant 0 : index
    %c0_54 = arith.constant 0 : index
    %132 = vector.load %arg8[%c1_52, %c0_53, %c0_54] : memref<2x1024x21xbf16, #tpu.memory_space<vmem>>, vector<1x1024x21xbf16>
    %133 = vector.shape_cast %132 : vector<1x1024x21xbf16> to vector<1024x21xbf16>
    %cst_55 = arith.constant dense<0.000000e+00> : vector<32x21xf32>
    %134 = tpu.matmul %131, %133, %cst_55 {dimension_numbers = #tpu.dot_dimension_numbers<[1], [0], [0], [1], [0, 0, 1, 1], [], []>} : vector<32x1024xbf16>, vector<1024x21xbf16>, vector<32x21xf32> -> vector<32x21xf32>
    %135 = arith.addf %122, %134 : vector<32x21xf32>
    %c1_56 = arith.constant 1 : index
    %c0_57 = arith.constant 0 : index
    %136 = vector.load %arg9[%c1_56, %c0_57] : memref<6x21xf32, #tpu.memory_space<vmem>>, vector<1x21xf32>
    %137 = vector.broadcast %136 : vector<1x21xf32> to vector<32x21xf32>
    %138 = arith.addf %135, %137 : vector<32x21xf32>
    %139 = arith.addf %107, %138 : vector<32x21xf32>
    %cst_58 = arith.constant dense<0.000000e+00> : vector<32xf32>
    %140 = vector.multi_reduction <add>, %139, %cst_58 [1] : vector<32x21xf32> to vector<32xf32>
    %141 = vector.shape_cast %140 : vector<32xf32> to vector<32x1xf32>
    %cst_59 = arith.constant 2.100000e+01 : f32
    %142 = vector.broadcast %cst_59 : f32 to vector<32x1xf32>
    %143 = arith.divf %141, %142 : vector<32x1xf32>
    %144 = vector.broadcast %143 : vector<32x1xf32> to vector<32x21xf32>
    %145 = arith.subf %139, %144 : vector<32x21xf32>
    %146 = arith.mulf %145, %145 : vector<32x21xf32>
    %cst_60 = arith.constant dense<0.000000e+00> : vector<32xf32>
    %147 = vector.multi_reduction <add>, %146, %cst_60 [1] : vector<32x21xf32> to vector<32xf32>
    %148 = vector.shape_cast %147 : vector<32xf32> to vector<32x1xf32>
    %cst_61 = arith.constant 2.100000e+01 : f32
    %149 = vector.broadcast %cst_61 : f32 to vector<32x1xf32>
    %150 = arith.divf %148, %149 : vector<32x1xf32>
    %151 = vector.broadcast %143 : vector<32x1xf32> to vector<32x21xf32>
    %152 = arith.subf %139, %151 : vector<32x21xf32>
    %cst_62 = arith.constant 9.99999974E-6 : f32
    %153 = vector.broadcast %cst_62 : f32 to vector<32x1xf32>
    %154 = arith.addf %150, %153 : vector<32x1xf32>
    %155 = math.rsqrt %154 : vector<32x1xf32>
    %156 = vector.broadcast %155 : vector<32x1xf32> to vector<32x21xf32>
    %157 = arith.mulf %152, %156 : vector<32x21xf32>
    %c4 = arith.constant 4 : index
    %c0_63 = arith.constant 0 : index
    %158 = vector.load %arg9[%c4, %c0_63] : memref<6x21xf32, #tpu.memory_space<vmem>>, vector<1x21xf32>
    %159 = vector.broadcast %158 : vector<1x21xf32> to vector<32x21xf32>
    %160 = arith.mulf %157, %159 : vector<32x21xf32>
    %c5 = arith.constant 5 : index
    %c0_64 = arith.constant 0 : index
    %161 = vector.load %arg9[%c5, %c0_64] : memref<6x21xf32, #tpu.memory_space<vmem>>, vector<1x21xf32>
    %162 = vector.broadcast %161 : vector<1x21xf32> to vector<32x21xf32>
    %163 = arith.addf %160, %162 : vector<32x21xf32>
    %164 = vector.shape_cast %163 : vector<32x21xf32> to vector<2x16x21xf32>
    %165 = tpu.transpose %164, [0, 2, 1] : vector<2x16x21xf32> -> vector<2x21x16xf32>
    %c0_65 = arith.constant 0 : index
    %c0_66 = arith.constant 0 : index
    %c0_67 = arith.constant 0 : index
    %166 = vector.load %arg10[%c0_65, %c0_66, %c0_67] : memref<2x21x16xf32, #tpu.memory_space<vmem>>, vector<2x21x16xf32>
    tpu.vector_store %arg10[%c0_65, %c0_66, %c0_67], %165 {strides = array<i32>} : memref<2x21x16xf32, #tpu.memory_space<vmem>>, vector<2x21x16xf32>,
    return
  }
  func.func @transform_0(%arg0: i32) -> (i32, i32, i32) {
    %c0_i32 = arith.constant 0 : i32
    %c0_i32_0 = arith.constant 0 : i32
    %c0_i32_1 = arith.constant 0 : i32
    return %arg0, %c0_i32, %c0_i32_0 : i32, i32, i32
  }
  func.func @transform_1(%arg0: i32) -> (i32, i32) {
    %c0_i32 = arith.constant 0 : i32
    %c0_i32_0 = arith.constant 0 : i32
    %c0_i32_1 = arith.constant 0 : i32
    return %c0_i32, %c0_i32_0 : i32, i32
  }
  func.func @transform_2(%arg0: i32) -> (i32, i32) {
    %c0_i32 = arith.constant 0 : i32
    %c0_i32_0 = arith.constant 0 : i32
    %c0_i32_1 = arith.constant 0 : i32
    return %c0_i32, %c0_i32_0 : i32, i32
  }
  func.func @transform_3(%arg0: i32) -> (i32, i32) {
    %c0_i32 = arith.constant 0 : i32
    %c0_i32_0 = arith.constant 0 : i32
    %c0_i32_1 = arith.constant 0 : i32
    return %c0_i32, %c0_i32_0 : i32, i32
  }
  func.func @transform_4(%arg0: i32) -> (i32, i32) {
    %c0_i32 = arith.constant 0 : i32
    %c0_i32_0 = arith.constant 0 : i32
    %c0_i32_1 = arith.constant 0 : i32
    return %c0_i32, %c0_i32_0 : i32, i32
  }
  func.func @transform_5(%arg0: i32) -> (i32, i32, i32) {
    %c0_i32 = arith.constant 0 : i32
    %c0_i32_0 = arith.constant 0 : i32
    %c0_i32_1 = arith.constant 0 : i32
    %c0_i32_2 = arith.constant 0 : i32
    return %c0_i32, %c0_i32_0, %c0_i32_1 : i32, i32, i32
  }
  func.func @transform_6(%arg0: i32) -> (i32, i32) {
    %c0_i32 = arith.constant 0 : i32
    %c0_i32_0 = arith.constant 0 : i32
    %c0_i32_1 = arith.constant 0 : i32
    return %c0_i32, %c0_i32_0 : i32, i32
  }
  func.func @transform_7(%arg0: i32) -> (i32, i32, i32) {
    %c0_i32 = arith.constant 0 : i32
    %c0_i32_0 = arith.constant 0 : i32
    %c0_i32_1 = arith.constant 0 : i32
    %c0_i32_2 = arith.constant 0 : i32
    return %c0_i32, %c0_i32_0, %c0_i32_1 : i32, i32, i32
  }
  func.func @transform_8(%arg0: i32) -> (i32, i32) {
    %c0_i32 = arith.constant 0 : i32
    %c0_i32_0 = arith.constant 0 : i32
    %c0_i32_1 = arith.constant 0 : i32
    return %c0_i32, %c0_i32_0 : i32, i32
  }
  func.func @transform_9(%arg0: i32) -> (i32, i32, i32) {
    %c0_i32 = arith.constant 0 : i32
    %c0_i32_0 = arith.constant 0 : i32
    %c0_i32_1 = arith.constant 0 : i32
    return %arg0, %c0_i32, %c0_i32_0 : i32, i32, i32
  }
}

</mosaic_0001>

<bundles_post_ra>
// kernel: eeg_attention_forward.1
= control target key start
LH: loop header
LB: loop body
LE: loop exit
PB: predicated region body
PF: predicated region fallthrough
CT: control target
= control target key end

     0   :  { %vm137_vm0 = vcmask 1041408   ;;  %vm138_vm1 = vcmask 1042432   ;;  %v5084_v6 = vmov 65535   ;;  %vm130_vm2 = vcmask 171008   ;;  %s5086_s28 = smov 86   ;;  %s5087_s29 = smov 100   ;;  %s6117_s0 = inlined_call_operand.vmem [shape: f32[2,21,16], index: 0, kind: input, shape index: {}]   ;;  %s6118_s2 = inlined_call_operand.vmem [shape: bf16[21,63], index: 2, kind: input, shape index: {}]   ;;  %s6119_s1 = inlined_call_operand.vmem [shape: f32[16,21], index: 1, kind: input, shape index: {}]   ;;  %s6120_s3 = inlined_call_operand.vmem [shape: f32[1,63], index: 3, kind: input, shape index: {}]   ;;  %s6121_s4 = inlined_call_operand.vmem [shape: bf16[21,21], index: 4, kind: input, shape index: {}]   ;;  %s6122_s8 = inlined_call_operand.vmem [shape: f32[6,21], index: 8, kind: input, shape index: {}]   ;;  %s6123_s5 = inlined_call_operand.vmem [shape: bf16[2,21,1024], index: 5, kind: input, shape index: {}]   ;;  %s6124_s7 = inlined_call_operand.vmem [shape: bf16[2,1024,21], index: 7, kind: input, shape index: {}]   ;;  %s6125_s6 = inlined_call_operand.vmem [shape: f32[1,2048], index: 6, kind: input, shape index: {}]   ;;  %s6126_s9 = inlined_call_operand.vmem [shape: f32[2,21,16], index: 9, kind: output, shape index: {}]  }
   0x1   :  { %v36_v0 = vld [vmem:[%s6117_s0 + $0x18] sm:$0xff]  ;;  %v33_v1 = vld [vmem:[%s6117_s0] sm:$0xff]  ;;  %v34_v3 = vld [vmem:[%s6117_s0 + $0x8] sm:$0xff]  ;;  %v139_v7 = vsel %vm137_vm0, 4294967295, %v5084_v6  ;;  %vm203_vm3 = vcmask 56320   ;;  %vm380_vm5 = vcmask 130048  }
   0x2   :  { %71 = vxpose.xlu1.b32.start [1/3] (short) (narrow) %v36_v0, 16  ;;  %39 = vxpose.xlu0.b32.start [1/3] (short) (narrow) %v33_v1, 16  ;;  %v37_v2 = vld [vmem:[%s6117_s0 + $0x20] sm:$0xff]  ;;  %v4873_v5 = vld [vmem:[%s6118_s2 + $0x8] ss:$0 sps:$4 sm:$0x77]   ;;  %vm5212_vm4 = vmpackc.low %vm203_vm3, %vm203_vm3 }
   0x3   :  { %v4872_v4 = vld [vmem:[%s6118_s2] sm:$0xff]   ;;  %v38_v8 = vld [vmem:[%s6117_s0 + $0x28] sm:$0x1f]  ;;  %v35_v9 = vld [vmem:[%s6117_s0 + $0x10] sm:$0x1f]  ;;  %v5170_v10 = vsel %vm138_vm1, %v139_v7, 0 }
   0x4   :  { %4619 = vmatprep.subr.bf16.mxu0 %v4872_v4  ;;  %v142_v11 = vand.u32 %v4873_v5, %v5170_v10  ;;  %v103_v14 = vld [vmem:[%s6119_s1] sm:$0xff]  ;;  %v104_v15 = vld [vmem:[%s6119_s1 + $0x8] sm:$0xff]  ;;  %s5088_s30 = smov 121   ;;  %s5089_s10 = smov 79   ;;  %vm1435_vm6 = vcmask 113664   ;;  %vm3963_vm7 = vcmask 126976  }
   0x5   :  { %4620 = vmatpush3.bf16.msra.mxu0 %v4872_v4  ;;  %v3972_v24 = vld [vmem:[%s6120_s3] ss:$0 sm:$0xff]  ;;  %s5085_s3 = smov 107   ;;  %s5090_s11 = smov 93  }
   0x6   :  { %72 = vxpose.xlu1.b32.cont [2/3] (short) (narrow) %v37_v2, 16  ;;  %40 = vxpose.xlu0.b32.cont [2/3] (short) (narrow) %v34_v3, 16  ;;  %s5091_s12 = smov 114   ;;  %s5092_s13 = smov 72  }
   0x7   :  { %4621 = vmatprep.subr.bf16.mxu0 %v142_v11  ;;  %s5093_s14 = smov 7   ;;  %s5094_s19 = smov 14  }
   0x9   :  { %4622 = vmatpush3.bf16.msra.mxu0 %v142_v11 }
   0xa   :  { %73 = vxpose.xlu1.b32.end [3/3] (short) (narrow) %v38_v8, 16  ;;  %41 = vxpose.xlu0.b32.end [3/3] (short) (narrow) %v35_v9, 16 }
  0x82   :  { %v87_v12 = vpop.trf.xlu1  ;;  %v55_v13 = vpop.trf.xlu0 }
  0x83   :  { %v5179_v18 = vadd.f32 %v103_v14, %v87_v12  ;;  %v5181_v19 = vadd.f32 %v103_v14, %v55_v13 }
  0x86   :  { %v88_v16 = vpop.trf.xlu1  ;;  %v56_v17 = vpop.trf.xlu0 }
  0x87   :  { %v5183_v20 = vadd.f32 %v104_v15, %v88_v16  ;;  %v5185_v21 = vadd.f32 %v104_v15, %v56_v17 }
  0x89   :  { %v110_v22 = vpack.c.bf16 %v5183_v20, %v5179_v18  ;;  %v109_v23 = vpack.c.bf16 %v5185_v21, %v5181_v19 }
  0x8b   :  { %4623 = vmatprep.mubr.msk.bf16.mxu0 %vm130_vm2, %v109_v23 }
  0x8c   :  { %4624 = vmatmul.mubr.msk.bf16.vlgmr.msra.gmra.mrb[0].mxu0 %vm130_vm2, %v110_v22 }
 0x15f   :  { %v4625_v25 = vpop.f32.mrb[0].mxu0 }
 0x160   :  { %v187_v26 = vadd.f32 %v4625_v25, %v3972_v24  ;;  %v178_v27 = vpop.f32.mrb[1].mxu0 }
 0x161   :  { %v179_v28 = vadd.f32 %v3972_v24, %v178_v27  ;;  %v4626_v29 = vpop.f32.mrb[2].mxu0 }
 0x162   :  { %v190_v30 = vadd.f32 %v4626_v29, %v3972_v24  ;;  %v181_v31 = vpop.f32.mrb[3].mxu0  ;;  %v5196_v32 = vmul.f32 0.37796447, %v187_v26 }
 0x163   :  { %v182_v33 = vadd.f32 %v3972_v24, %v181_v31  ;;  %v5198_v34 = vmul.f32 0.37796447, %v179_v28 }
 0x164   :  { %4638 = vmatprep.mubr.msk.f32.mxu0 %vm203_vm3, %v5196_v32  ;;  %v5202_v35 = vpack.i.bf16 %v190_v30, %v187_v26  ;;  %v5224_v46 = vmul.f32 0.37796447, %v190_v30 }
 0x165   :  { %4631 = vmatprep.mubr.msk.f32.mxu1 %vm203_vm3, %v5198_v34  ;;  %v5206_v36 = vpack.i.bf16 %v182_v33, %v179_v28  ;;  %v5226_v47 = vmul.f32 0.37796447, %v182_v33 }
 0x166   :  { %4798 = vrot.lane.b32.xlu1 %v5202_v35, %s5085_s3 }
 0x167   :  { %4793 = vrot.lane.b32.xlu0 %v5206_v36, %s5085_s3 }
 0x1d8   :  { %v4799_v37 = vpop.permute.xlu1 %4798 }
 0x1d9   :  { %v4801_v38 = vunpack.i.h.bf16 %v4799_v37  ;;  %v4800_v39 = vunpack.i.l.bf16 %v4799_v37  ;;  %v4794_v40 = vpop.permute.xlu0 %4793 }
 0x1da   :  { %v4796_v41 = vunpack.i.h.bf16 %v4794_v40  ;;  %v4795_v42 = vunpack.i.l.bf16 %v4794_v40 }
 0x1db   :  { %v4725_v44 = vpack.c.bf16 %v4801_v38, %v4800_v39 }
 0x1dc   :  { %v4719_v45 = vpack.c.bf16 %v4796_v41, %v4795_v42 }
 0x1dd   :  { %4727 = vmatprep.subr.msk.bf16.mxu0 %vm5212_vm4, %v4725_v44 }
 0x1de   :  { %4721 = vmatprep.subr.msk.bf16.mxu1 %vm5212_vm4, %v4719_v45  ;;  %4730 = vmatpush3.bf16.xpose.msk.msra.mxu0 %vm5212_vm4, %v4725_v44 }
 0x1df   :  { %4724 = vmatpush3.bf16.xpose.msk.msra.mxu1 %vm5212_vm4, %v4719_v45 }
 0x1e5   :  { %4639 = vmatmul.mubr.msk.f32.vlgmr.msra.gmra.mrb[4].mxu0 %vm203_vm3, %v5224_v46 }
 0x1e6   :  { %4632 = vmatmul.mubr.msk.f32.vlgmr.msra.gmra.mrb[0].mxu1 %vm203_vm3, %v5226_v47 }
 0x2b8   :  { %v4640_v48 = vpop.f32.mrb[4].mxu0 }
 0x2b9   :  { %v4633_v49 = vpop.f32.mrb[0].mxu1  ;;  %v371_v50 = vpop.f32.mrb[5].mxu0  ;;  %v390_v55 = vsel %vm380_vm5, %v4640_v48, -inf }
 0x2ba   :  { %v280_v51 = vpop.f32.mrb[1].mxu1  ;;  %v384_v52 = vsel %vm380_vm5, %v4633_v49, -inf  ;;  %v387_v54 = vsel %vm380_vm5, %v371_v50, -inf }
 0x2bb   :  { %385 = vmax.xlane.f32.xlu0 %v384_v52  ;;  %v381_v53 = vsel %vm380_vm5, %v280_v51, -inf }
 0x2bc   :  { %382 = vmax.xlane.f32.xlu1 %v381_v53 }
 0x2c0   :  { %388 = vmax.xlane.f32.xlu1 %v387_v54 }
 0x2c4   :  { %391 = vmax.xlane.f32.xlu1 %v390_v55 }
 0x2d1   :  { %4803 = vrot.lane.b32.xlu0 %v5206_v36, %s5086_s28 }
 0x2d5   :  { %4808 = vrot.lane.b32.xlu1 %v5202_v35, %s5086_s28 }
 0x2d9   :  { %4813 = vrot.lane.b32.xlu1 %v5206_v36, %s5087_s29 }
 0x348   :  { %v386_v56 = vpop.xlane.xlu0 %385 }
 0x349   :  { %v383_v57 = vpop.xlane.xlu1 %382  ;;  %v394_v1 = vsub.f32 %v4633_v49, %v386_v56 }
 0x34a   :  { %v393_v58 = vsub.f32 %v280_v51, %v383_v57 }
 0x34b   :  { %v399_v6 = vmul.f32 1.442695, %v394_v1 }
 0x34c   :  { %v4804_v59 = vpop.permute.xlu0 %4803  ;;  %v397_v2 = vmul.f32 1.442695, %v393_v58 }
 0x34d   :  { %v4806_v60 = vunpack.i.h.bf16 %v4804_v59  ;;  %v4805_v61 = vunpack.i.l.bf16 %v4804_v59  ;;  %v389_v62 = vpop.xlane.xlu1 %388 }
 0x34e   :  { %v395_v63 = vsub.f32 %v371_v50, %v389_v62 }
 0x34f   :  { %v4731_v0 = vpack.c.bf16 %v4806_v60, %v4805_v61 }
 0x350   :  { %v401_v3 = vmul.f32 1.442695, %v395_v63 }
 0x351   :  { %4732 = vmatprep.subr.bf16.mxu1 %v4731_v0  ;;  %v392_v4 = vpop.xlane.xlu1 %391 }
 0x352   :  { %5020 = vpow2.f32 %v401_v3  ;;  %v396_v5 = vsub.f32 %v4640_v48, %v392_v4  ;;  %4734 = vmatpush3.bf16.msra.mxu1 %v4731_v0 }
 0x353   :  { %5022 = vpow2.f32 %v397_v2 }
 0x354   :  { %v403_v7 = vmul.f32 1.442695, %v396_v5 }
 0x355   :  { %v4809_v8 = vpop.permute.xlu1 %4808 }
 0x356   :  { %5024 = vpow2.f32 %v403_v7  ;;  %v4811_v9 = vunpack.i.h.bf16 %v4809_v8  ;;  %v4810_v11 = vunpack.i.l.bf16 %v4809_v8 }
 0x357   :  { %5026 = vpow2.f32 %v399_v6 }
 0x358   :  { %v4735_v12 = vpack.c.bf16 %v4811_v9, %v4810_v11 }
 0x359   :  { %v4814_v13 = vpop.permute.xlu1 %4813 }
 0x35a   :  { %v4816_v14 = vunpack.i.h.bf16 %v4814_v13  ;;  %v4815_v15 = vunpack.i.l.bf16 %v4814_v13  ;;  %4736 = vmatprep.subr.bf16.mxu1 %v4735_v12 }
 0x35c   :  { %v5021_v16 = vpop.eup %5020  ;;  %v4739_v17 = vpack.c.bf16 %v4816_v14, %v4815_v15 }
 0x35d   :  { %v411_v22 = vsel %vm380_vm5, %v5021_v16, 0.0  ;;  %v5023_v23 = vpop.eup %5022 }
 0x35e   :  { %412 = vadd.xlane.f32.xlu0 %v411_v22  ;;  %4741 = vmatprep.subr.msk.bf16.mxu0 %vm5212_vm4, %v4739_v17  ;;  %v405_v25 = vsel %vm380_vm5, %v5023_v23, 0.0 }
 0x35f   :  { %4744 = vmatpush3.bf16.xpose.msk.msra.mxu0 %vm5212_vm4, %v4739_v17 }
 0x360   :  { %v5025_v24 = vpop.eup %5024 }
 0x361   :  { %v414_v26 = vsel %vm380_vm5, %v5025_v24, 0.0  ;;  %v5027_v27 = vpop.eup %5026 }
 0x362   :  { %406 = vadd.xlane.f32.xlu0 %v405_v25  ;;  %415 = vadd.xlane.f32.xlu1 %v414_v26  ;;  %v408_v28 = vsel %vm380_vm5, %v5027_v27, 0.0 }
 0x366   :  { %409 = vadd.xlane.f32.xlu1 %v408_v28 }
 0x377   :  { %4818 = vrot.lane.b32.xlu1 %v5202_v35, %s5087_s29 }
 0x378   :  { %599 = vrot.lane.b32.xlu0 %v5198_v34, %s5088_s30 }
 0x37b   :  { %690 = vrot.lane.b32.xlu1 %v5196_v32, %s5088_s30 }
 0x37c   :  { %601 = vrot.lane.b32.xlu0 %v5226_v47, %s5088_s30 }
 0x380   :  { %692 = vrot.lane.b32.xlu0 %v5224_v46, %s5088_s30 }
 0x3eb   :  { %v413_v29 = vpop.xlane.xlu0 %412 }
 0x3ef   :  { %v407_v30 = vpop.xlane.xlu0 %406  ;;  %v416_v31 = vpop.xlane.xlu1 %415 }
 0x3f0   :  { %5028 = vrcp.f32 %v407_v30 }
 0x3f1   :  { %5030 = vrcp.f32 %v413_v29 }
 0x3f3   :  { %v600_v33 = vpop.permute.xlu0 %599  ;;  %v410_v37 = vpop.xlane.xlu1 %409 }
 0x3f4   :  { %5032 = vrcp.f32 %v410_v37  ;;  %4659 = vmatprep.mubr.msk.f32.mxu0 %vm203_vm3, %v600_v33 }
 0x3f5   :  { %5034 = vrcp.f32 %v416_v31 }
 0x3f7   :  { %v602_v38 = vpop.permute.xlu0 %601  ;;  %v4819_v40 = vpop.permute.xlu1 %4818 }
 0x3f8   :  { %4660 = vmatmul.mubr.msk.f32.vlgmr.msra.gmra.mrb[6].mxu0 %vm203_vm3, %v602_v38  ;;  %v4821_v44 = vunpack.i.h.bf16 %v4819_v40  ;;  %v4820_v45 = vunpack.i.l.bf16 %v4819_v40 }
 0x3fa   :  { %v5029_v39 = vpop.eup %5028  ;;  %v4745_v52 = vpack.c.bf16 %v4821_v44, %v4820_v45 }
 0x3fb   :  { %v421_v41 = vmul.f32 %v5029_v39, %v5023_v23  ;;  %v5031_v42 = vpop.eup %5030  ;;  %v691_v54 = vpop.permute.xlu1 %690 }
 0x3fc   :  { %v423_v51 = vmul.f32 %v5031_v42, %v5021_v16  ;;  %v693_v55 = vpop.permute.xlu0 %692 }
 0x3fd   :  { %4645 = vmatprep.mubr.msk.f32.mxu1 %vm380_vm5, %v421_v41 }
 0x3fe   :  { %v5033_v48 = vpop.eup %5032 }
 0x3ff   :  { %v422_v49 = vmul.f32 %v5033_v48, %v5027_v27  ;;  %v5035_v50 = vpop.eup %5034 }
 0x400   :  { %v424_v53 = vmul.f32 %v5035_v50, %v5025_v24 }
 0x401   :  { %4646 = vmatmul.mubr.msk.f32.vlgmr.msra.gmra.mrb[2].mxu1 %vm380_vm5, %v422_v49 }
 0x402   :  { %4738 = vmatpush3.bf16.msra.mxu1 %v4735_v12  ;;  %4652 = vmatprep.mubr.msk.f32.mxu1 %vm380_vm5, %v423_v51 }
 0x403   :  { %4747 = vmatprep.subr.msk.bf16.mxu1 %vm5212_vm4, %v4745_v52 }
 0x405   :  { %4653 = vmatmul.mubr.msk.f32.vlgmr.msra.gmra.mrb[4].mxu1 %vm380_vm5, %v424_v53 }
 0x406   :  { %4666 = vmatprep.mubr.msk.f32.mxu1 %vm203_vm3, %v691_v54 }
 0x40b   :  { %4750 = vmatpush3.bf16.xpose.msk.msra.mxu1 %vm5212_vm4, %v4745_v52 }
 0x412   :  { %4667 = vmatmul.mubr.msk.f32.vlgmr.msra.gmra.mrb[6].mxu1 %vm203_vm3, %v693_v55 }
 0x4cb   :  { %v4661_v56 = vpop.f32.mrb[6].mxu0 }
 0x4cc   :  { %v681_v57 = vpop.f32.mrb[7].mxu0  ;;  %v784_v58 = vsel %vm380_vm5, %v4661_v56, -inf }
 0x4cd   :  { %785 = vmax.xlane.f32.xlu0 %v784_v58  ;;  %v781_v59 = vsel %vm380_vm5, %v681_v57, -inf }
 0x4ce   :  { %782 = vmax.xlane.f32.xlu1 %v781_v59 }
 0x4d4   :  { %v5268_v60 = vpop.f32.mrb[2].mxu1 }
 0x4d5   :  { %v5270_v61 = vpop.f32.mrb[3].mxu1 }
 0x4d8   :  { %v5272_v62 = vpop.f32.mrb[4].mxu1 }
 0x4d9   :  { %v5274_v63 = vpop.f32.mrb[5].mxu1 }
 0x4e5   :  { %v4668_v0 = vpop.f32.mrb[6].mxu1 }
 0x4e6   :  { %v772_v1 = vpop.f32.mrb[7].mxu1  ;;  %v790_v2 = vsel %vm380_vm5, %v4668_v0, -inf }
 0x4e7   :  { %791 = vmax.xlane.f32.xlu1 %v790_v2  ;;  %v787_v3 = vsel %vm380_vm5, %v772_v1, -inf }
 0x4e8   :  { %788 = vmax.xlane.f32.xlu0 %v787_v3 }
 0x55a   :  { %v786_v4 = vpop.xlane.xlu0 %785 }
 0x55b   :  { %v794_v5 = vsub.f32 %v4661_v56, %v786_v4  ;;  %v783_v6 = vpop.xlane.xlu1 %782 }
 0x55c   :  { %v793_v7 = vsub.f32 %v681_v57, %v783_v6 }
 0x55d   :  { %v799_v8 = vmul.f32 1.442695, %v794_v5 }
 0x55e   :  { %v797_v9 = vmul.f32 1.442695, %v793_v7 }
 0x55f   :  { %5036 = vpow2.f32 %v799_v8 }
 0x560   :  { %5038 = vpow2.f32 %v797_v9 }
 0x569   :  { %v5037_v11 = vpop.eup %5036 }
 0x56a   :  { %v5039_v12 = vpop.eup %5038  ;;  %v808_v13 = vsel %vm380_vm5, %v5037_v11, 0.0 }
 0x56b   :  { %809 = vadd.xlane.f32.xlu1 %v808_v13  ;;  %v805_v14 = vsel %vm380_vm5, %v5039_v12, 0.0 }
 0x56c   :  { %806 = vadd.xlane.f32.xlu0 %v805_v14 }
 0x574   :  { %v792_v16 = vpop.xlane.xlu1 %791 }
 0x575   :  { %v789_v15 = vpop.xlane.xlu0 %788  ;;  %v796_v22 = vsub.f32 %v4668_v0, %v792_v16 }
 0x576   :  { %v795_v17 = vsub.f32 %v772_v1, %v789_v15 }
 0x577   :  { %v803_v24 = vmul.f32 1.442695, %v796_v22 }
 0x578   :  { %v801_v23 = vmul.f32 1.442695, %v795_v17 }
 0x57a   :  { %5040 = vpow2.f32 %v801_v23 }
 0x57b   :  { %5042 = vpow2.f32 %v803_v24 }
 0x57c   :  { %4828 = vrot.lane.b32.xlu1 %v5202_v35, %s5089_s10 }
 0x580   :  { %4833 = vrot.lane.b32.xlu1 %v5206_v36, %s5090_s11 }
 0x582   :  { %4823 = vrot.lane.b32.xlu0 %v5206_v36, %s5089_s10 }
 0x584   :  { %999 = vrot.lane.b32.xlu1 %v5198_v34, %s5091_s12  ;;  %v5041_v25 = vpop.eup %5040 }
 0x585   :  { %v5043_v26 = vpop.eup %5042  ;;  %v811_v27 = vsel %vm380_vm5, %v5041_v25, 0.0 }
 0x586   :  { %4838 = vrot.lane.b32.xlu0 %v5202_v35, %s5090_s11  ;;  %v814_v28 = vsel %vm380_vm5, %v5043_v26, 0.0 }
 0x5a5   :  { %812 = vadd.xlane.f32.xlu0 %v811_v27 }
 0x5a8   :  { %815 = vadd.xlane.f32.xlu1 %v814_v28 }
 0x5b9   :  { %1090 = vrot.lane.b32.xlu1 %v5196_v32, %s5091_s12 }
 0x5bb   :  { %1001 = vrot.lane.b32.xlu0 %v5226_v47, %s5091_s12 }
 0x5bf   :  { %1092 = vrot.lane.b32.xlu0 %v5224_v46, %s5091_s12 }
 0x5f8   :  { %v810_v34 = vpop.xlane.xlu1 %809 }
 0x5f9   :  { %5044 = vrcp.f32 %v810_v34  ;;  %v807_v29 = vpop.xlane.xlu0 %806 }
 0x5fa   :  { %5046 = vrcp.f32 %v807_v29 }
 0x5fc   :  { %v4829_v30 = vpop.permute.xlu1 %4828 }
 0x5fd   :  { %v4824_v31 = vpop.permute.xlu0 %4823  ;;  %v4831_v33 = vunpack.i.h.bf16 %v4829_v30  ;;  %v4830_v37 = vunpack.i.l.bf16 %v4829_v30 }
 0x5fe   :  { %v4826_v38 = vunpack.i.h.bf16 %v4824_v31  ;;  %v4825_v39 = vunpack.i.l.bf16 %v4824_v31 }
 0x5ff   :  { %v4755_v32 = vpack.c.bf16 %v4831_v33, %v4830_v37 }
 0x600   :  { %v4751_v40 = vpack.c.bf16 %v4826_v38, %v4825_v39  ;;  %v4834_v41 = vpop.permute.xlu1 %4833 }
 0x601   :  { %v4836_v42 = vunpack.i.h.bf16 %v4834_v41  ;;  %v4835_v44 = vunpack.i.l.bf16 %v4834_v41  ;;  %v4839_v45 = vpop.permute.xlu0 %4838 }
 0x602   :  { %4752 = vmatprep.subr.bf16.mxu1 %v4751_v40  ;;  %v4841_v49 = vunpack.i.h.bf16 %v4839_v45  ;;  %v4840_v50 = vunpack.i.l.bf16 %v4839_v45 }
 0x603   :  { %v5045_v47 = vpop.eup %5044  ;;  %v4759_v48 = vpack.c.bf16 %v4836_v42, %v4835_v44  ;;  %4754 = vmatpush3.bf16.msra.mxu1 %v4751_v40 }
 0x604   :  { %v5047_v46 = vpop.eup %5046  ;;  %v1000_v51 = vpop.permute.xlu1 %999  ;;  %4756 = vmatprep.subr.bf16.mxu1 %v4755_v32  ;;  %v822_v53 = vmul.f32 %v5045_v47, %v5037_v11  ;;  %v4765_v54 = vpack.c.bf16 %v4841_v49, %v4840_v50 }
 0x605   :  { %4761 = vmatprep.subr.msk.bf16.mxu0 %vm5212_vm4, %v4759_v48  ;;  %4687 = vmatprep.mubr.msk.f32.mxu0 %vm203_vm3, %v1000_v51  ;;  %v821_v52 = vmul.f32 %v5047_v46, %v5039_v12 }
 0x606   :  { %4764 = vmatpush3.bf16.xpose.msk.msra.mxu0 %vm5212_vm4, %v4759_v48 }
 0x607   :  { %4673 = vmatprep.mubr.msk.f32.mxu1 %vm380_vm5, %v821_v52 }
 0x608   :  { %4674 = vmatmul.mubr.msk.f32.vlgmr.msra.gmra.mrb[8].mxu1 %vm380_vm5, %v822_v53 }
 0x609   :  { %4758 = vmatpush3.bf16.msra.mxu1 %v4755_v32 }
 0x60a   :  { %4767 = vmatprep.subr.msk.bf16.mxu1 %vm5212_vm4, %v4765_v54 }
 0x632   :  { %v813_v55 = vpop.xlane.xlu0 %812 }
 0x633   :  { %5048 = vrcp.f32 %v813_v55 }
 0x635   :  { %v816_v56 = vpop.xlane.xlu1 %815 }
 0x636   :  { %5050 = vrcp.f32 %v816_v56  ;;  %v1002_v57 = vpop.permute.xlu0 %1001 }
 0x637   :  { %4688 = vmatmul.mubr.msk.f32.vlgmr.msra.gmra.mrb[8].mxu0 %vm203_vm3, %v1002_v57 }
 0x639   :  { %v1091_v2 = vpop.permute.xlu1 %1090 }
 0x63a   :  { %v1093_v3 = vpop.permute.xlu0 %1092 }
 0x63d   :  { %v5049_v58 = vpop.eup %5048 }
 0x63e   :  { %v823_v59 = vmul.f32 %v5049_v58, %v5041_v25 }
 0x640   :  { %v5051_v0 = vpop.eup %5050  ;;  %4680 = vmatprep.mubr.msk.f32.mxu1 %vm380_vm5, %v823_v59 }
 0x641   :  { %v824_v1 = vmul.f32 %v5051_v0, %v5043_v26 }
 0x643   :  { %4681 = vmatmul.mubr.msk.f32.vlgmr.msra.gmra.mrb[10].mxu1 %vm380_vm5, %v824_v1 }
 0x644   :  { %4770 = vmatpush3.bf16.xpose.msk.msra.mxu1 %vm5212_vm4, %v4765_v54  ;;  %4694 = vmatprep.mubr.msk.f32.mxu1 %vm203_vm3, %v1091_v2 }
 0x64b   :  { %4695 = vmatmul.mubr.msk.f32.vlgmr.msra.gmra.mrb[12].mxu1 %vm203_vm3, %v1093_v3  ;;  %v4874_v3 = vld [vmem:[%s6121_s4] sm:$0xff]  }
 0x6db   :  { %v4675_v4 = vpop.f32.mrb[8].mxu1 }
 0x6dc   :  { %v903_v5 = vpop.f32.mrb[9].mxu1 }
 0x6dd   :  { %v4852_v6 = vpack.i.bf16 %v4675_v4, %v903_v5  ;;  %v4875_v4 = vld [vmem:[%s6121_s4 + $0x8] ss:$0 sps:$4 sm:$0x77]  }
 0x6de   :  { %v1466_v5 = vand.u32 %v4875_v4, %v5170_v10 }
 0x70a   :  { %v4689_v7 = vpop.f32.mrb[8].mxu0 }
 0x70b   :  { %v1081_v8 = vpop.f32.mrb[9].mxu0  ;;  %v1184_v9 = vsel %vm380_vm5, %v4689_v7, -inf }
 0x70c   :  { %1185 = vmax.xlane.f32.xlu0 %v1184_v9  ;;  %v1181_v11 = vsel %vm380_vm5, %v1081_v8, -inf }
 0x70d   :  { %1182 = vmax.xlane.f32.xlu1 %v1181_v11 }
 0x716   :  { %v4682_v12 = vpop.f32.mrb[10].mxu1 }
 0x717   :  { %v990_v13 = vpop.f32.mrb[11].mxu1 }
 0x718   :  { %v4857_v43 = vpack.i.bf16 %v4682_v12, %v990_v13 }
 0x71e   :  { %v4696_v14 = vpop.f32.mrb[12].mxu1 }
 0x71f   :  { %v1172_v15 = vpop.f32.mrb[13].mxu1  ;;  %v1190_v16 = vsel %vm380_vm5, %v4696_v14, -inf }
 0x720   :  { %1191 = vmax.xlane.f32.xlu1 %v1190_v16  ;;  %v1187_v17 = vsel %vm380_vm5, %v1172_v15, -inf }
 0x721   :  { %1188 = vmax.xlane.f32.xlu0 %v1187_v17 }
 0x799   :  { %v1186_v22 = vpop.xlane.xlu0 %1185 }
 0x79a   :  { %v1194_v23 = vsub.f32 %v4689_v7, %v1186_v22  ;;  %v1183_v24 = vpop.xlane.xlu1 %1182 }
 0x79b   :  { %v1193_v25 = vsub.f32 %v1081_v8, %v1183_v24 }
 0x79c   :  { %v1199_v26 = vmul.f32 1.442695, %v1194_v23 }
 0x79d   :  { %v1197_v27 = vmul.f32 1.442695, %v1193_v25 }
 0x79e   :  { %5052 = vpow2.f32 %v1199_v26 }
 0x79f   :  { %5054 = vpow2.f32 %v1197_v27 }
 0x7a8   :  { %v5053_v28 = vpop.eup %5052 }
 0x7a9   :  { %v5055_v34 = vpop.eup %5054  ;;  %v1208_v29 = vsel %vm380_vm5, %v5053_v28, 0.0 }
 0x7aa   :  { %1209 = vadd.xlane.f32.xlu1 %v1208_v29  ;;  %v1205_v30 = vsel %vm380_vm5, %v5055_v34, 0.0 }
 0x7ab   :  { %1206 = vadd.xlane.f32.xlu0 %v1205_v30 }
 0x7ad   :  { %v1192_v31 = vpop.xlane.xlu1 %1191 }
 0x7ae   :  { %v1196_v33 = vsub.f32 %v4696_v14, %v1192_v31  ;;  %v1189_v37 = vpop.xlane.xlu0 %1188 }
 0x7af   :  { %v1195_v38 = vsub.f32 %v1172_v15, %v1189_v37 }
 0x7b0   :  { %v1203_v39 = vmul.f32 1.442695, %v1196_v33 }
 0x7b1   :  { %v1201_v40 = vmul.f32 1.442695, %v1195_v38 }
 0x7b2   :  { %5056 = vpow2.f32 %v1203_v39 }
 0x7b3   :  { %5058 = vpow2.f32 %v1201_v40 }
 0x7bc   :  { %v5057_v41 = vpop.eup %5056 }
 0x7bd   :  { %v5059_v42 = vpop.eup %5058  ;;  %v1214_v44 = vsel %vm380_vm5, %v5057_v41, 0.0 }
 0x7be   :  { %1215 = vadd.xlane.f32.xlu1 %v1214_v44  ;;  %v1211_v45 = vsel %vm380_vm5, %v5059_v42, 0.0 }
 0x7bf   :  { %1212 = vadd.xlane.f32.xlu0 %v1211_v45 }
 0x7cf   :  { %4848 = vrot.lane.b32.xlu1 %v5202_v35, %s5092_s13 }
 0x7d3   :  { %4853 = vrot.lane.b32.xlu1 %v4852_v6, %s5093_s14 }
 0x7d5   :  { %4843 = vrot.lane.b32.xlu0 %v5206_v36, %s5092_s13 }
 0x7d9   :  { %4858 = vrot.lane.b32.xlu0 %v4857_v43, %s5093_s14 }
 0x837   :  { %v1210_v46 = vpop.xlane.xlu1 %1209 }
 0x838   :  { %v1207_v32 = vpop.xlane.xlu0 %1206 }
 0x839   :  { %5060 = vrcp.f32 %v1207_v32 }
 0x83a   :  { %5062 = vrcp.f32 %v1210_v46 }
 0x843   :  { %v5061_v47 = vpop.eup %5060 }
 0x844   :  { %v1221_v48 = vmul.f32 %v5061_v47, %v5055_v34  ;;  %v5063_v57 = vpop.eup %5062 }
 0x845   :  { %v1222_v0 = vmul.f32 %v5063_v57, %v5053_v28 }
 0x846   :  { %4701 = vmatprep.mubr.msk.f32.mxu0 %vm380_vm5, %v1221_v48 }
 0x84b   :  { %v1216_v49 = vpop.xlane.xlu1 %1215 }
 0x84c   :  { %5064 = vrcp.f32 %v1216_v49  ;;  %v1213_v50 = vpop.xlane.xlu0 %1212 }
 0x84d   :  { %5066 = vrcp.f32 %v1213_v50 }
 0x84f   :  { %v4849_v51 = vpop.permute.xlu1 %4848 }
 0x850   :  { %v4851_v52 = vunpack.i.h.bf16 %v4849_v51  ;;  %v4850_v35 = vunpack.i.l.bf16 %v4849_v51  ;;  %v4844_v53 = vpop.permute.xlu0 %4843 }
 0x851   :  { %v4846_v54 = vunpack.i.h.bf16 %v4844_v53  ;;  %v4845_v55 = vunpack.i.l.bf16 %v4844_v53 }
 0x852   :  { %v4775_v36 = vpack.c.bf16 %v4851_v52, %v4850_v35 }
 0x853   :  { %v4771_v56 = vpack.c.bf16 %v4846_v54, %v4845_v55  ;;  %v4854_v13 = vpop.permute.xlu1 %4853 }
 0x854   :  { %4776 = vmatprep.subr.bf16.mxu1 %v4775_v36  ;;  %v4859_v43 = vpop.permute.xlu0 %4858  ;;  %v4856_v14 = vunpack.i.h.bf16 %v4854_v13  ;;  %v4855_v15 = vunpack.i.l.bf16 %v4854_v13  ;;  %v1599_v13 = vld [vmem:[%s6123_s5 + $0x28] sm:$0xff] }
 0x855   :  { %4772 = vmatprep.subr.bf16.mxu0 %v4771_v56  ;;  %4778 = vmatpush3.bf16.msra.mxu1 %v4775_v36  ;;  %v4861_v16 = vunpack.i.h.bf16 %v4859_v43  ;;  %v4860_v17 = vunpack.i.l.bf16 %v4859_v43 }
 0x856   :  { %v5065_v58 = vpop.eup %5064  ;;  %4774 = vmatpush3.bf16.msra.mxu0 %v4771_v56  ;;  %v1432_v25 = vsel %vm203_vm3, %v5268_v60, %v4856_v14  ;;  %v1431_v26 = vsel %vm203_vm3, %v5270_v61, %v4855_v15  ;;  %v4013_v60 = vld [vmem:[%s6122_s8] ss:$0 sm:$0xff] }
 0x857   :  { %v5067_v59 = vpop.eup %5066  ;;  %v1224_v2 = vmul.f32 %v5065_v58, %v5057_v41  ;;  %4711 = vmatprep.subr.bf16.mxu0 %v4874_v3  ;;  %v1434_v31 = vsel %vm203_vm3, %v5272_v62, %v4861_v16  ;;  %v1433_v33 = vsel %vm203_vm3, %v5274_v63, %v4860_v17  ;;  %v1602_v16 = vld [vmem:[%s6123_s5 + $0x40] sm:$0x77]  ;;  %v1603_v17 = vld [vmem:[%s6123_s5 + $0x48] sm:$0x77] }
 0x858   :  { %v1223_v1 = vmul.f32 %v5067_v59, %v5059_v42 }
 0x859   :  { %4702 = vmatmul.mubr.msk.f32.vlgmr.msra.gmra.mrb[10].mxu0 %vm380_vm5, %v1222_v0 }
 0x85a   :  { %4708 = vmatprep.mubr.msk.f32.mxu1 %vm380_vm5, %v1223_v1  ;;  %4712 = vmatpush3.bf16.msra.mxu0 %v4874_v3 }
 0x85b   :  { %4709 = vmatmul.mubr.msk.f32.vlgmr.msra.gmra.mrb[14].mxu1 %vm380_vm5, %v1224_v2  ;;  %4713 = vmatprep.subr.bf16.mxu0 %v1466_v5 }
 0x85e   :  { %4714 = vmatpush3.bf16.msra.mxu0 %v1466_v5 }
 0x92c   :  { %v4703_v6 = vpop.f32.mrb[10].mxu0 }
 0x92d   :  { %v1303_v7 = vpop.f32.mrb[11].mxu0 }
 0x92e   :  { %v4862_v8 = vpack.i.bf16 %v4703_v6, %v1303_v7  ;;  %v4710_v9 = vpop.f32.mrb[14].mxu1 }
 0x92f   :  { %v1390_v11 = vpop.f32.mrb[15].mxu1 }
 0x930   :  { %v4867_v12 = vpack.i.bf16 %v4710_v9, %v1390_v11  ;;  %4863 = vrot.lane.b32.xlu1 %v4862_v8, %s5094_s19  ;;  %v1594_v8 = vld [vmem:[%s6123_s5] sm:$0xff]  ;;  %v1595_v11 = vld [vmem:[%s6123_s5 + $0x8] sm:$0xff] }
 0x931   :  { %v1598_v9 = vld [vmem:[%s6123_s5 + $0x20] sm:$0xff]  ;;  %v4022_v14 = vcombine.low %v1595_v11, %v1599_v13  ;;  %v4023_v15 = vcombine.high %v1595_v11, %v1599_v13  ;;  %v4049_v13 = vld [vmem:[%s6123_s5 + $0x88] sm:$0xff] }
 0x932   :  { %4868 = vrot.lane.b32.xlu0 %v4867_v12, %s5094_s19  ;;  %v4021_v12 = vcombine.high %v1594_v8, %v1598_v9  ;;  %v4020_v43 = vcombine.low %v1594_v8, %v1598_v9  ;;  %v4044_v8 = vld [vmem:[%s6123_s5 + $0x60] sm:$0xff] }
 0x933   :  { %1791 = vmatprep.subr.bf16.mxu0 %v4023_v15  ;;  %v4048_v9 = vld [vmem:[%s6123_s5 + $0x80] sm:$0xff] }
 0x934   :  { %1738 = vmatprep.subr.bf16.mxu1 %v4021_v12  ;;  %v4045_v12 = vld [vmem:[%s6123_s5 + $0x68] sm:$0xff]  ;;  %v4057_v15 = vcombine.high %v4044_v8, %v4048_v9 }
 0x935   :  { %1739 = vmatpush1.bf16.msra.mxu1 %v4020_v43 }
 0x9a2   :  { %v4864_v22 = vpop.permute.xlu1 %4863 }
 0x9a3   :  { %v4866_v23 = vunpack.i.h.bf16 %v4864_v22  ;;  %v4865_v24 = vunpack.i.l.bf16 %v4864_v22  ;;  %v4029_v22 = vcombine.high %v1602_v16, %v1602_v16 }
 0x9a4   :  { %v4869_v27 = vpop.permute.xlu0 %4868 }
 0x9a5   :  { %v1437_v28 = vsel %vm1435_vm6, %v1432_v25, %v4866_v23  ;;  %v1436_v34 = vsel %vm1435_vm6, %v1431_v26, %v4865_v24  ;;  %v4871_v29 = vunpack.i.h.bf16 %v4869_v27  ;;  %v4870_v30 = vunpack.i.l.bf16 %v4869_v27 }
 0x9a6   :  { %v1440_v37 = vpack.c.bf16 %v1437_v28, %v1436_v34  ;;  %v4031_v23 = vcombine.high %v1603_v17, %v1603_v17  ;;  %v4028_v24 = vcombine.low %v1602_v16, %v1602_v16  ;;  %v4030_v25 = vcombine.low %v1603_v17, %v1603_v17 }
 0x9a7   :  { %v1438_v38 = vsel %vm1435_vm6, %v1433_v33, %v4870_v30  ;;  %v1439_v39 = vsel %vm1435_vm6, %v1434_v31, %v4871_v29  ;;  %v1718_v26 = vand.u32 %v4029_v22, %v5170_v10  ;;  %v5095_v29 = vmov 0   ;;  %v1596_v30 = vld [vmem:[%s6123_s5 + $0x10] sm:$0xff]  ;;  %v1597_v33 = vld [vmem:[%s6123_s5 + $0x18] sm:$0xff] }
 0x9a8   :  { %v1441_v40 = vpack.c.bf16 %v1439_v39, %v1438_v38  ;;  %4715 = vmatprep.mubr.msk.bf16.mxu0 %vm130_vm2, %v1440_v37  ;;  %v1724_v27 = vand.u32 %v4031_v23, %v5170_v10  ;;  %v1715_v28 = vand.u32 %v4028_v24, %v5170_v10  ;;  %v1721_v34 = vand.u32 %v4030_v25, %v5170_v10  ;;  %v1600_v31 = vld [vmem:[%s6123_s5 + $0x30] sm:$0xff]  ;;  %v1601_v39 = vld [vmem:[%s6123_s5 + $0x38] sm:$0xff]  ;;  %v4052_v24 = vld [vmem:[%s6123_s5 + $0xa0] sm:$0x77] }
 0x9a9   :  { %1740 = vmatprep.subr.bf16.mxu1 %v1718_v26  ;;  %1770 = vmatprep.mubr.bf16.mxu1 %v5095_v29  ;;  %v4024_v37 = vcombine.low %v1596_v30, %v1600_v31  ;;  %v4025_v38 = vcombine.high %v1596_v30, %v1600_v31  ;;  %v4059_v22 = vcombine.high %v4045_v12, %v4049_v13  ;;  %v4053_v25 = vld [vmem:[%s6123_s5 + $0xa8] sm:$0x77] }
 0x9aa   :  { %4716 = vmatmul.mubr.msk.bf16.vlgmr.msra.gmra.mrb[12].mxu0 %vm130_vm2, %v1441_v40  ;;  %1741 = vmatpush1.bf16.msra.mxu1 %v1715_v28  ;;  %v4026_v40 = vcombine.low %v1597_v33, %v1601_v39  ;;  %v4065_v26 = vcombine.high %v4052_v24, %v4052_v24  ;;  %v4056_v28 = vcombine.low %v4044_v8, %v4048_v9  ;;  %v4910_v8 = vld [vmem:[%s6124_s7 + $0x220] sm:$0xff]  }
 0x9ab   :  { %1792 = vmatpush1.bf16.msra.mxu0 %v4022_v14  ;;  %1823 = vmatprep.mubr.bf16.mxu0 %v5095_v29  ;;  %v4064_v30 = vcombine.low %v4052_v24, %v4052_v24  ;;  %v4066_v31 = vcombine.low %v4053_v25, %v4053_v25  ;;  %v4911_v9 = vld [vmem:[%s6124_s7 + $0x2a0] sm:$0xff]   ;;  %v4922_v24 = vld [vmem:[%s6124_s7 + $0x238] sm:$0xff]  }
 0x9ac   :  { %1793 = vmatprep.subr.bf16.mxu0 %v1724_v27  ;;  %1844 = vmatprep.subr.bf16.mxu1 %v4025_v38  ;;  %v4067_v27 = vcombine.high %v4053_v25, %v4053_v25  ;;  %v4923_v25 = vld [vmem:[%s6124_s7 + $0x2b8] sm:$0xff]  }
 0x9ae   :  { %v2251_v38 = vand.u32 %v4067_v27, %v5170_v10  ;;  %v4925_v27 = vld [vmem:[%s6124_s7 + $0x3c0] sm:$0xff]  }
 0x9af   :  { %1794 = vmatpush1.bf16.msra.mxu0 %v1721_v34  ;;  %v4058_v34 = vcombine.low %v4045_v12, %v4049_v13  ;;  %v4915_v12 = vld [vmem:[%s6124_s7 + $0x2a8] sm:$0xff]   ;;  %v4916_v13 = vld [vmem:[%s6124_s7 + $0x270] sm:$0xff]  }
 0xa7d   :  { %v4717_v61 = vpop.f32.mrb[12].mxu0 }
 0xa7e   :  { %v1502_v41 = vpop.f32.mrb[13].mxu0  ;;  %v1511_v32 = vadd.f32 %v4717_v61, %v4013_v60 }
 0xa7f   :  { %v1503_v42 = vadd.f32 %v4013_v60, %v1502_v41  ;;  %v4718_v44 = vpop.f32.mrb[14].mxu0 }
 0xa80   :  { %v1514_v62 = vadd.f32 %v4718_v44, %v4013_v60  ;;  %v1505_v45 = vpop.f32.mrb[15].mxu0  ;;  %v1519_v51 = vadd.f32 %v1511_v32, %v5179_v18 }
 0xa81   :  { %v1506_v63 = vadd.f32 %v4013_v60, %v1505_v45  ;;  %v1517_v47 = vadd.f32 %v1503_v42, %v5181_v19  ;;  %v4027_v60 = vcombine.high %v1597_v33, %v1601_v39  ;;  %v4046_v33 = vld [vmem:[%s6123_s5 + $0x70] sm:$0xff] }
 0xa82   :  { %v1520_v49 = vadd.f32 %v1514_v62, %v5183_v20  ;;  %v1527_v35 = vsel %vm130_vm2, %v1519_v51, 0.0  ;;  %v4050_v39 = vld [vmem:[%s6123_s5 + $0x90] sm:$0xff] }
 0xa83   :  { %v1521_v48 = vsel %vm130_vm2, %v1517_v47, 0.0  ;;  %v1518_v46 = vadd.f32 %v1506_v63, %v5185_v21  ;;  %1897 = vmatprep.subr.bf16.mxu0 %v4027_v60  ;;  %v4051_v60 = vld [vmem:[%s6123_s5 + $0x98] sm:$0xff] }
 0xa84   :  { %1522 = vadd.xlane.f32.xlu1 %v1521_v48  ;;  %v1530_v52 = vsel %vm130_vm2, %v1520_v49, 0.0 }
 0xa85   :  { %v1524_v50 = vsel %vm130_vm2, %v1518_v46, 0.0 }
 0xa86   :  { %1525 = vadd.xlane.f32.xlu0 %v1524_v50 }
 0xa88   :  { %1531 = vadd.xlane.f32.xlu1 %v1530_v52 }
 0xa8a   :  { %1528 = vadd.xlane.f32.xlu0 %v1527_v35 }
 0xb11   :  { %v1523_v53 = vpop.xlane.xlu1 %1522 }
 0xb12   :  { %v1534_v19 = vmul.f32 0.04761905, %v1523_v53 }
 0xb13   :  { %v1526_v54 = vpop.xlane.xlu0 %1525 }
 0xb14   :  { %v5348_v55 = vsub.f32 %v1517_v47, %v1534_v19  ;;  %v1535_v21 = vmul.f32 0.04761905, %v1526_v54  ;;  %v1604_v54 = vld [vmem:[%s6123_s5 + $0x50] sm:$0x77] }
 0xb15   :  { %v1532_v36 = vpop.xlane.xlu1 %1531 }
 0xb16   :  { %v5350_v20 = vsub.f32 %v1518_v46, %v1535_v21  ;;  %v1537_v56 = vmul.f32 0.04761905, %v1532_v36  ;;  %v1542_v18 = vmul.f32 %v5348_v55, %v5348_v55  ;;  %v1605_v21 = vld [vmem:[%s6123_s5 + $0x58] sm:$0x77]  ;;  %v4019_v36 = vld [vmem:[%s6122_s8 + $0x3] ss:$0 sm:$0xff] }
 0xb17   :  { %v1529_v57 = vpop.xlane.xlu0 %1528 }
 0xb18   :  { %v5354_v58 = vsub.f32 %v1520_v49, %v1537_v56  ;;  %v1536_v59 = vmul.f32 0.04761905, %v1529_v57  ;;  %v1546_v0 = vsel %vm130_vm2, %v1542_v18, 0.0  ;;  %v1543_v1 = vmul.f32 %v5350_v20, %v5350_v20 }
 0xb19   :  { %1547 = vadd.xlane.f32.xlu0 %v1546_v0  ;;  %v4033_v57 = vcombine.high %v1604_v54, %v1604_v54 }
 0xb1a   :  { %v5359_v2 = vsub.f32 %v1519_v51, %v1536_v59  ;;  %v1549_v3 = vsel %vm130_vm2, %v1543_v1, 0.0  ;;  %v1545_v4 = vmul.f32 %v5354_v58, %v5354_v58  ;;  %v4018_v51 = vld [vmem:[%s6122_s8 + $0x2] ss:$0 sm:$0xff] }
 0xb1b   :  { %1550 = vadd.xlane.f32.xlu1 %v1549_v3 }
 0xb1c   :  { %v1544_v5 = vmul.f32 %v5359_v2, %v5359_v2  ;;  %v1555_v7 = vsel %vm130_vm2, %v1545_v4, 0.0  ;;  %v4032_v4 = vcombine.low %v1604_v54, %v1604_v54  ;;  %v4896_v54 = vld [vmem:[%s6124_s7 + $0x248] sm:$0xff]  }
 0xb1e   :  { %v1552_v6 = vsel %vm130_vm2, %v1544_v5, 0.0  ;;  %v4034_v5 = vcombine.low %v1605_v21, %v1605_v21  ;;  %v1727_v43 = vand.u32 %v4032_v4, %v5170_v10  ;;  %v4906_v4 = vld [vmem:[%s6124_s7 + $0x218] sm:$0xff]  }
 0xb1f   :  { %1553 = vadd.xlane.f32.xlu0 %v1552_v6  ;;  %1556 = vadd.xlane.f32.xlu1 %v1555_v7 }
 0xb20   :  { %v1733_v14 = vand.u32 %v4034_v5, %v5170_v10  ;;  %v4907_v5 = vld [vmem:[%s6124_s7 + $0x298] sm:$0xff]  }
 0xba6   :  { %v1548_v61 = vpop.xlane.xlu0 %1547 }
 0xba7   :  { %v1558_v41 = vmul.f32 0.04761905, %v1548_v61  ;;  %v2242_v61 = vand.u32 %v4064_v30, %v5170_v10  ;;  %v1606_v30 = vld [vmem:[%s6125_s6] sm:$0xff] }
 0xba8   :  { %v1551_v42 = vpop.xlane.xlu1 %1550 }
 0xba9   :  { %v1562_v44 = vadd.f32 1e-05, %v1558_v41  ;;  %v1559_v62 = vmul.f32 0.04761905, %v1551_v42  ;;  %v2248_v41 = vand.u32 %v4066_v31, %v5170_v10  ;;  %v4061_v42 = vcombine.high %v4046_v33, %v4050_v39 }
 0xbab   :  { %5068 = vrsqrt.f32 %v1562_v44  ;;  %v1563_v45 = vadd.f32 1e-05, %v1559_v62  ;;  %v4054_v62 = vld [vmem:[%s6123_s5 + $0xb0] sm:$0x77] }
 0xbac   :  { %v1554_v32 = vpop.xlane.xlu0 %1553  ;;  %v1557_v63 = vpop.xlane.xlu1 %1556 }
 0xbad   :  { %5070 = vrsqrt.f32 %v1563_v45  ;;  %v1560_v47 = vmul.f32 0.04761905, %v1554_v32  ;;  %v1561_v48 = vmul.f32 0.04761905, %v1557_v63  ;;  %v4055_v45 = vld [vmem:[%s6123_s5 + $0xb8] sm:$0x77]  ;;  %v4069_v32 = vcombine.high %v4054_v62, %v4054_v62 }
 0xbae   :  { %v4071_v63 = vcombine.high %v4055_v45, %v4055_v45 }
 0xbaf   :  { %v1564_v46 = vadd.f32 1e-05, %v1560_v47  ;;  %v1565_v49 = vadd.f32 1e-05, %v1561_v48  ;;  %v4060_v47 = vcombine.low %v4046_v33, %v4050_v39 }
 0xbb1   :  { %5072 = vrsqrt.f32 %v1564_v46  ;;  %v4068_v46 = vcombine.low %v4054_v62, %v4054_v62 }
 0xbb2   :  { %5074 = vrsqrt.f32 %v1565_v49  ;;  %v4070_v49 = vcombine.low %v4055_v45, %v4055_v45 }
 0xbb5   :  { %v5069_v50 = vpop.eup %5068 }
 0xbb6   :  { %v1570_v52 = vmul.f32 %v5069_v50, %v5348_v55  ;;  %v4035_v55 = vcombine.high %v1605_v21, %v1605_v21  ;;  %v2257_v50 = vand.u32 %v4069_v32, %v5170_v10  ;;  %v4897_v21 = vld [vmem:[%s6124_s7 + $0x2c8] sm:$0xff]  }
 0xbb7   :  { %v5071_v35 = vpop.eup %5070 }
 0xbb8   :  { %v1579_v53 = vmul.f32 %v4018_v51, %v1570_v52  ;;  %v1571_v19 = vmul.f32 %v5071_v35, %v5350_v20  ;;  %v2254_v52 = vand.u32 %v4068_v46, %v5170_v10  ;;  %v2260_v35 = vand.u32 %v4070_v49, %v5170_v10 }
 0xbba   :  { %v1580_v56 = vmul.f32 %v4018_v51, %v1571_v19  ;;  %v5418_v0 = vadd.f32 %v4019_v36, %v1579_v53  ;;  %v4893_v53 = vld [vmem:[%s6124_s7 + $0x2c0] sm:$0xff]  }
 0xbbb   :  { %v5073_v18 = vpop.eup %5072  ;;  %v4894_v19 = vld [vmem:[%s6124_s7 + $0x200] sm:$0xff]  }
 0xbbc   :  { %v5075_v59 = vpop.eup %5074  ;;  %v5420_v20 = vadd.f32 %v4019_v36, %v1580_v56  ;;  %v1572_v1 = vmul.f32 %v5073_v18, %v5359_v2  ;;  %v1730_v2 = vand.u32 %v4033_v57, %v5170_v10  ;;  %v4899_v56 = vld [vmem:[%s6124_s7 + $0x288] sm:$0xff]   ;;  %v4900_v18 = vld [vmem:[%s6124_s7 + $0x250] sm:$0xff]  }
 0xbbd   :  { %v1573_v3 = vmul.f32 %v5075_v59, %v5354_v58  ;;  %v1736_v58 = vand.u32 %v4035_v55, %v5170_v10  ;;  %v4901_v57 = vld [vmem:[%s6124_s7 + $0x2d0] sm:$0xff]  }
 0xbbe   :  { %v5426_v6 = vpack.c.bf16 %v5420_v20, %v5418_v0  ;;  %v1581_v7 = vmul.f32 %v4018_v51, %v1572_v1  ;;  %v4902_v55 = vld [vmem:[%s6124_s7 + $0x210] sm:$0xff]   ;;  %v4904_v1 = vld [vmem:[%s6124_s7 + $0x258] sm:$0xff]  }
 0xbbf   :  { %v1582_v11 = vmul.f32 %v4018_v51, %v1573_v3  ;;  %v2263_v51 = vand.u32 %v4071_v63, %v5170_v10  ;;  %v4903_v59 = vld [vmem:[%s6124_s7 + $0x290] sm:$0xff]   ;;  %v4905_v3 = vld [vmem:[%s6124_s7 + $0x2d8] sm:$0xff]  }
 0xbc0   :  { %4036 = vmatmul.mubr.msk.bf16.vlgmr.msra.gmra.mrb[16].mxu1 %vm130_vm2, %v5426_v6  ;;  %4038 = vmatmul.mubr.msk.bf16.vlgmr.msra.gmra.mrb[16].mxu0 %vm130_vm2, %v5426_v6  ;;  %v5448_v16 = vadd.f32 %v4019_v36, %v1581_v7  ;;  %v4909_v7 = vld [vmem:[%s6124_s7 + $0x2e0] sm:$0xff]  }
 0xbc1   :  { %1845 = vmatpush1.bf16.msra.mxu1 %v4024_v37  ;;  %1898 = vmatpush1.bf16.msra.mxu0 %v4026_v40  ;;  %v5450_v17 = vadd.f32 %v4019_v36, %v1582_v11  ;;  %v2245_v37 = vand.u32 %v4065_v26, %v5170_v10  ;;  %v4047_v40 = vld [vmem:[%s6123_s5 + $0x78] sm:$0xff]  ;;  %v4892_v10 = vld [vmem:[%s6124_s7 + $0x240] sm:$0xff]   ;;  %v4898_v36 = vld [vmem:[%s6124_s7 + $0x208] sm:$0xff]  }
 0xbc2   :  { %1780 = vmatprep.mubr.bf16.mxu1 %v5095_v29  ;;  %1833 = vmatprep.mubr.bf16.mxu0 %v5095_v29  ;;  %v4063_v44 = vcombine.high %v4047_v40, %v4051_v60  ;;  %v4062_v48 = vcombine.low %v4047_v40, %v4051_v60  ;;  %v4912_v11 = vld [vmem:[%s6124_s7 + $0x268] sm:$0xff]   ;;  %v4924_v26 = vld [vmem:[%s6124_s7 + $0x340] sm:$0xff]  }
 0xbc3   :  { %1846 = vmatprep.subr.bf16.mxu1 %v1730_v2  ;;  %1899 = vmatprep.subr.bf16.mxu0 %v1736_v58  ;;  %v5456_v23 = vpack.c.bf16 %v5450_v17, %v5448_v16  ;;  %v4913_v2 = vld [vmem:[%s6124_s7 + $0x2e8] sm:$0xff]  }
 0xbc4   :  { %v4914_v58 = vld [vmem:[%s6124_s7 + $0x228] sm:$0xff]  }
 0xbc5   :  { %1847 = vmatpush1.bf16.msra.mxu1 %v1727_v43  ;;  %1900 = vmatpush1.bf16.msra.mxu0 %v1733_v14  ;;  %v4917_v43 = vld [vmem:[%s6124_s7 + $0x2f0] sm:$0xff]  }
 0xbc6   :  { %2265 = vmatprep.subr.bf16.mxu1 %v4057_v15  ;;  %2318 = vmatprep.subr.bf16.mxu0 %v4059_v22  ;;  %v4918_v14 = vld [vmem:[%s6124_s7 + $0x230] sm:$0xff]   ;;  %v4920_v22 = vld [vmem:[%s6124_s7 + $0x278] sm:$0xff]  }
 0xbc7   :  { %v4919_v15 = vld [vmem:[%s6124_s7 + $0x2b0] sm:$0xff]  }
 0xbc8   :  { %4037 = vmatmul.mubr.msk.bf16.gmra.mrb[20].mxu1 %vm130_vm2, %v5456_v23  ;;  %4039 = vmatmul.mubr.msk.bf16.gmra.mrb[20].mxu0 %vm130_vm2, %v5456_v23 }
 0xbc9   :  { %1876 = vmatprep.mubr.bf16.mxu1 %v5095_v29  ;;  %1929 = vmatprep.mubr.bf16.mxu0 %v5095_v29 }
 0xbd0   :  { %4040 = vmatmul.mubr.msk.bf16.vlgmr.msra.gmra.mrb[24].mxu1 %vm130_vm2, %v5426_v6  ;;  %4042 = vmatmul.mubr.msk.bf16.vlgmr.msra.gmra.mrb[24].mxu0 %vm130_vm2, %v5426_v6 }
 0xbd1   :  { %2266 = vmatpush1.bf16.msra.mxu1 %v4056_v28  ;;  %2319 = vmatpush1.bf16.msra.mxu0 %v4058_v34  ;;  %v1608_v28 = vlaneseq }
 0xbd2   :  { %1886 = vmatprep.mubr.bf16.mxu1 %v5095_v29  ;;  %1939 = vmatprep.mubr.bf16.mxu0 %v5095_v29 }
 0xbd3   :  { %2267 = vmatprep.subr.bf16.mxu1 %v2245_v37  ;;  %2320 = vmatprep.subr.bf16.mxu0 %v2251_v38  ;;  %v5632_v34 = vshrl.u32 %v1608_v28, 7 }
 0xbd5   :  { %2268 = vmatpush1.bf16.msra.mxu1 %v2242_v61  ;;  %2321 = vmatpush1.bf16.msra.mxu0 %v2248_v41  ;;  %v1610_v31 = vsub.s32 0, %v5632_v34  ;;  %v1618_v33 = vsub.s32 2, %v5632_v34  ;;  %v1614_v37 = vsub.s32 1, %v5632_v34  ;;  %v1622_v38 = vsub.s32 3, %v5632_v34 }
 0xbd6   :  { %2371 = vmatprep.subr.bf16.mxu1 %v4061_v42  ;;  %2424 = vmatprep.subr.bf16.mxu0 %v4063_v44 }
 0xbd7   :  { %v1611_v39 = vrot.slane %v1606_v30, %v1610_v31  ;;  %v1619_v40 = vrot.slane %v1606_v30, %v1618_v33  ;;  %v1615_v60 = vrot.slane %v1606_v30, %v1614_v37  ;;  %v1623_v61 = vrot.slane %v1606_v30, %v1622_v38 }
 0xbd8   :  { %4041 = vmatmul.mubr.msk.bf16.gmra.mrb[28].mxu1 %vm130_vm2, %v5456_v23  ;;  %4043 = vmatmul.mubr.msk.bf16.gmra.mrb[28].mxu0 %vm130_vm2, %v5456_v23 }
 0xbd9   :  { %2297 = vmatprep.mubr.bf16.mxu1 %v5095_v29  ;;  %2350 = vmatprep.mubr.bf16.mxu0 %v5095_v29 }
 0xbe0   :  { %4072 = vmatmul.mubr.msk.bf16.vlgmr.msra.gmra.mrb[32].mxu1 %vm130_vm2, %v5426_v6  ;;  %4074 = vmatmul.mubr.msk.bf16.vlgmr.msra.gmra.mrb[32].mxu0 %vm130_vm2, %v5426_v6 }
 0xbe1   :  { %2307 = vmatprep.mubr.bf16.mxu1 %v5095_v29  ;;  %2360 = vmatprep.mubr.bf16.mxu0 %v5095_v29 }
 0xbe2   :  { %2372 = vmatpush1.bf16.msra.mxu1 %v4060_v47  ;;  %2425 = vmatpush1.bf16.msra.mxu0 %v4062_v48 }
 0xbe3   :  { %2373 = vmatprep.subr.bf16.mxu1 %v2257_v50  ;;  %2426 = vmatprep.subr.bf16.mxu0 %v2263_v51 }
 0xbe6   :  { %2374 = vmatpush1.bf16.msra.mxu1 %v2254_v52  ;;  %2427 = vmatpush1.bf16.msra.mxu0 %v2260_v35  ;;  %v1626_v35 = vsub.s32 4, %v5632_v34 }
 0xbe7   :  { %4395 = vmatprep.subr.bf16.mxu1 %v4892_v10  ;;  %4423 = vmatprep.subr.bf16.mxu0 %v4893_v53  ;;  %v1634_v10 = vsub.s32 6, %v5632_v34 }
 0xbe8   :  { %4073 = vmatmul.mubr.msk.bf16.gmra.mrb[36].mxu1 %vm130_vm2, %v5456_v23  ;;  %4075 = vmatmul.mubr.msk.bf16.gmra.mrb[36].mxu0 %vm130_vm2, %v5456_v23 }
 0xbe9   :  { %2403 = vmatprep.mubr.bf16.mxu1 %v5095_v29  ;;  %2456 = vmatprep.mubr.bf16.mxu0 %v5095_v29 }
 0xbf0   :  { %4076 = vmatmul.mubr.msk.bf16.vlgmr.msra.gmra.mrb[40].mxu1 %vm130_vm2, %v5426_v6  ;;  %4078 = vmatmul.mubr.msk.bf16.vlgmr.msra.gmra.mrb[40].mxu0 %vm130_vm2, %v5426_v6  ;;  %v4908_v6 = vld [vmem:[%s6124_s7 + $0x260] sm:$0xff]  }
 0xbf1   :  { %2413 = vmatprep.mubr.bf16.mxu1 %v5095_v29  ;;  %2466 = vmatprep.mubr.bf16.mxu0 %v5095_v29  ;;  %v4895_v29 = vld [vmem:[%s6124_s7 + $0x280] sm:$0xff]  }
 0xbf2   :  { %4396 = vmatpush3.bf16.msra.mxu1 %v4894_v19  ;;  %4424 = vmatpush3.bf16.msra.mxu0 %v4895_v29 }
 0xbf3   :  { %4397 = vmatprep.subr.bf16.mxu1 %v4896_v54  ;;  %4425 = vmatprep.subr.bf16.mxu0 %v4897_v21 }
 0xbf6   :  { %4398 = vmatpush3.bf16.msra.mxu1 %v4898_v36  ;;  %4426 = vmatpush3.bf16.msra.mxu0 %v4899_v56 }
 0xbf7   :  { %4399 = vmatprep.subr.bf16.mxu1 %v4900_v18  ;;  %4427 = vmatprep.subr.bf16.mxu0 %v4901_v57 }
 0xbf8   :  { %4077 = vmatmul.mubr.msk.bf16.gmra.mrb[44].mxu1 %vm130_vm2, %v5456_v23  ;;  %4079 = vmatmul.mubr.msk.bf16.gmra.mrb[44].mxu0 %vm130_vm2, %v5456_v23  ;;  %v4921_v23 = vld [vmem:[%s6124_s7 + $0x2f8] sm:$0xff]  }
 0xbfa   :  { %4400 = vmatpush3.bf16.msra.mxu1 %v4902_v55  ;;  %4428 = vmatpush3.bf16.msra.mxu0 %v4903_v59 }
 0xbfb   :  { %4401 = vmatprep.subr.bf16.mxu1 %v4904_v1  ;;  %4429 = vmatprep.subr.bf16.mxu0 %v4905_v3  ;;  %v1630_v3 = vsub.s32 5, %v5632_v34 }
 0xbfe   :  { %4402 = vmatpush3.bf16.msra.mxu1 %v4906_v4  ;;  %4430 = vmatpush3.bf16.msra.mxu0 %v4907_v5  ;;  %v1638_v4 = vsub.s32 7, %v5632_v34 }
 0xbff   :  { %4403 = vmatprep.subr.bf16.mxu1 %v4908_v6  ;;  %4431 = vmatprep.subr.bf16.mxu0 %v4909_v7 }
 0xc02   :  { %4404 = vmatpush3.bf16.msra.mxu1 %v4910_v8  ;;  %4432 = vmatpush3.bf16.msra.mxu0 %v4911_v9 }
 0xc03   :  { %4405 = vmatprep.subr.bf16.mxu1 %v4912_v11  ;;  %4433 = vmatprep.subr.bf16.mxu0 %v4913_v2 }
 0xc06   :  { %4406 = vmatpush3.bf16.msra.mxu1 %v4914_v58  ;;  %4434 = vmatpush3.bf16.msra.mxu0 %v4915_v12 }
 0xc07   :  { %4407 = vmatprep.subr.bf16.mxu1 %v4916_v13  ;;  %4435 = vmatprep.subr.bf16.mxu0 %v4917_v43 }
 0xc0a   :  { %4408 = vmatpush3.bf16.msra.mxu1 %v4918_v14  ;;  %4436 = vmatpush3.bf16.msra.mxu0 %v4919_v15 }
 0xc0b   :  { %4409 = vmatprep.subr.bf16.mxu1 %v4920_v22  ;;  %4437 = vmatprep.subr.bf16.mxu0 %v4921_v23 }
 0xc0e   :  { %4410 = vmatpush3.bf16.msra.mxu1 %v4922_v24  ;;  %4438 = vmatpush3.bf16.msra.mxu0 %v4923_v25  ;;  %v1627_v25 = vrot.slane %v1606_v30, %v1626_v35 }
 0xc0f   :  { %4451 = vmatprep.subr.bf16.mxu1 %v4924_v26  ;;  %4479 = vmatprep.subr.bf16.mxu0 %v4925_v27  ;;  %v1635_v26 = vrot.slane %v1606_v30, %v1634_v10 }
 0xc93   :  { %v1772_v41 = vpop.f32.mrb[16].mxu1  ;;  %v1825_v42 = vpop.f32.mrb[16].mxu0 }
 0xc94   :  { %v1773_v44 = vadd.f32 %v1772_v41, %v1611_v39  ;;  %v1826_v62 = vadd.f32 %v1825_v42, %v1619_v40  ;;  %v1774_v45 = vpop.f32.mrb[17].mxu1  ;;  %v1827_v32 = vpop.f32.mrb[17].mxu0  ;;  %v1631_v41 = vrot.slane %v1606_v30, %v1630_v3  ;;  %v1639_v42 = vrot.slane %v1606_v30, %v1638_v4 }
 0xc95   :  { %v1775_v63 = vadd.f32 %v1774_v45, %v1615_v60  ;;  %v1828_v47 = vadd.f32 %v1827_v32, %v1623_v61  ;;  %v1776_v48 = vpop.f32.mrb[18].mxu1  ;;  %v1829_v46 = vpop.f32.mrb[18].mxu0 }
 0xc96   :  { %v1777_v49 = vadd.f32 %v1776_v48, %v1611_v39  ;;  %v1830_v50 = vadd.f32 %v1829_v46, %v1619_v40  ;;  %v1778_v51 = vpop.f32.mrb[19].mxu1  ;;  %v1831_v52 = vpop.f32.mrb[19].mxu0  ;;  %v1950_v53 = vmax.f32 %v1773_v44, 0.0  ;;  %v1952_v19 = vmax.f32 %v1826_v62, 0.0 }
 0xc97   :  { %v1779_v29 = vadd.f32 %v1778_v51, %v1615_v60  ;;  %v1832_v54 = vadd.f32 %v1831_v52, %v1623_v61  ;;  %v1951_v21 = vmax.f32 %v1775_v63, 0.0  ;;  %v1953_v36 = vmax.f32 %v1828_v47, 0.0 }
 0xc98   :  { %v1958_v56 = vmax.f32 %v1777_v49, 0.0  ;;  %v1960_v18 = vmax.f32 %v1830_v50, 0.0 }
 0xc99   :  { %v1959_v57 = vmax.f32 %v1779_v29, 0.0  ;;  %v1961_v55 = vmax.f32 %v1832_v54, 0.0 }
 0xc9a   :  { %v5651_v59 = vpack.c.bf16 %v1958_v56, %v1950_v53  ;;  %v5653_v1 = vpack.c.bf16 %v1960_v18, %v1952_v19 }
 0xc9b   :  { %v5657_v5 = vpack.c.bf16 %v1959_v57, %v1951_v21  ;;  %v5659_v6 = vpack.c.bf16 %v1961_v55, %v1953_v36  ;;  %v1782_v7 = vpop.f32.mrb[20].mxu1  ;;  %v1835_v8 = vpop.f32.mrb[20].mxu0 }
 0xc9c   :  { %v1783_v9 = vadd.f32 %v1782_v7, %v1611_v39  ;;  %v1836_v11 = vadd.f32 %v1835_v8, %v1619_v40  ;;  %v1784_v2 = vpop.f32.mrb[21].mxu1  ;;  %v1837_v58 = vpop.f32.mrb[21].mxu0 }
 0xc9d   :  { %v1785_v12 = vadd.f32 %v1784_v2, %v1615_v60  ;;  %v1838_v13 = vadd.f32 %v1837_v58, %v1623_v61  ;;  %v1786_v43 = vpop.f32.mrb[22].mxu1  ;;  %v1839_v14 = vpop.f32.mrb[22].mxu0 }
 0xc9e   :  { %v1787_v15 = vadd.f32 %v1786_v43, %v1611_v39  ;;  %v1840_v22 = vadd.f32 %v1839_v14, %v1619_v40  ;;  %v1788_v23 = vpop.f32.mrb[23].mxu1  ;;  %v1841_v24 = vpop.f32.mrb[23].mxu0  ;;  %v1966_v44 = vmax.f32 %v1783_v9, 0.0  ;;  %v1968_v62 = vmax.f32 %v1836_v11, 0.0 }
 0xc9f   :  { %v1789_v27 = vadd.f32 %v1788_v23, %v1615_v60  ;;  %v1842_v28 = vadd.f32 %v1841_v24, %v1623_v61  ;;  %v1967_v45 = vmax.f32 %v1785_v12, 0.0  ;;  %v1969_v32 = vmax.f32 %v1838_v13, 0.0 }
 0xca0   :  { %v1974_v39 = vmax.f32 %v1787_v15, 0.0  ;;  %v1976_v40 = vmax.f32 %v1840_v22, 0.0 }
 0xca1   :  { %v1975_v63 = vmax.f32 %v1789_v27, 0.0  ;;  %v1977_v47 = vmax.f32 %v1842_v28, 0.0  ;;  %v5688_v28 = vld [vmem:[%s6125_s6 + $0x8] sm:$0xff] }
 0xca2   :  { %v5669_v48 = vpack.c.bf16 %v1974_v39, %v1966_v44  ;;  %v5671_v46 = vpack.c.bf16 %v1976_v40, %v1968_v62 }
 0xca3   :  { %v5673_v60 = vpack.c.bf16 %v1975_v63, %v1967_v45  ;;  %v5675_v61 = vpack.c.bf16 %v1977_v47, %v1969_v32  ;;  %v1878_v49 = vpop.f32.mrb[24].mxu1  ;;  %v1931_v50 = vpop.f32.mrb[24].mxu0 }
 0xca4   :  { %v1879_v51 = vadd.f32 %v1878_v49, %v1627_v25  ;;  %v1932_v30 = vadd.f32 %v1931_v50, %v1635_v26  ;;  %v1880_v52 = vpop.f32.mrb[25].mxu1  ;;  %v1933_v53 = vpop.f32.mrb[25].mxu0 }
 0xca5   :  { %v1881_v19 = vadd.f32 %v1880_v52, %v1631_v41  ;;  %v1934_v29 = vadd.f32 %v1933_v53, %v1639_v42  ;;  %v1882_v54 = vpop.f32.mrb[26].mxu1  ;;  %v1935_v21 = vpop.f32.mrb[26].mxu0  ;;  %v5693_v52 = vrot.slane %v5688_v28, %v1610_v31  ;;  %v5698_v53 = vrot.slane %v5688_v28, %v1618_v33 }
 0xca6   :  { %v1883_v36 = vadd.f32 %v1882_v54, %v1627_v25  ;;  %v1936_v56 = vadd.f32 %v1935_v21, %v1635_v26  ;;  %v1884_v18 = vpop.f32.mrb[27].mxu1  ;;  %v1937_v57 = vpop.f32.mrb[27].mxu0  ;;  %v1954_v8 = vmax.f32 %v1879_v51, 0.0  ;;  %v1956_v9 = vmax.f32 %v1932_v30, 0.0 }
 0xca7   :  { %v1885_v55 = vadd.f32 %v1884_v18, %v1631_v41  ;;  %v1938_v7 = vadd.f32 %v1937_v57, %v1639_v42  ;;  %v1955_v58 = vmax.f32 %v1881_v19, 0.0  ;;  %v1957_v12 = vmax.f32 %v1934_v29, 0.0 }
 0xca8   :  { %v1962_v11 = vmax.f32 %v1883_v36, 0.0  ;;  %v1964_v2 = vmax.f32 %v1936_v56, 0.0  ;;  %v5703_v54 = vrot.slane %v5688_v28, %v1614_v37 }
 0xca9   :  { %v1963_v13 = vmax.f32 %v1885_v55, 0.0  ;;  %v1965_v43 = vmax.f32 %v1938_v7, 0.0 }
 0xcaa   :  { %v5677_v14 = vpack.c.bf16 %v1962_v11, %v1954_v8  ;;  %v5679_v15 = vpack.c.bf16 %v1964_v2, %v1956_v9 }
 0xcab   :  { %v5681_v22 = vpack.c.bf16 %v1963_v13, %v1955_v58  ;;  %v5683_v23 = vpack.c.bf16 %v1965_v43, %v1957_v12  ;;  %v1888_v24 = vpop.f32.mrb[28].mxu1  ;;  %v1941_v27 = vpop.f32.mrb[28].mxu0 }
 0xcac   :  { %v1889_v44 = vadd.f32 %v1888_v24, %v1627_v25  ;;  %v1942_v62 = vadd.f32 %v1941_v27, %v1635_v26  ;;  %v1890_v39 = vpop.f32.mrb[29].mxu1  ;;  %v1943_v40 = vpop.f32.mrb[29].mxu0 }
 0xcad   :  { %v1891_v45 = vadd.f32 %v1890_v39, %v1631_v41  ;;  %v1944_v32 = vadd.f32 %v1943_v40, %v1639_v42  ;;  %v1892_v63 = vpop.f32.mrb[30].mxu1  ;;  %v1945_v47 = vpop.f32.mrb[30].mxu0 }
 0xcae   :  { %v1893_v49 = vadd.f32 %v1892_v63, %v1627_v25  ;;  %v1946_v50 = vadd.f32 %v1945_v47, %v1635_v26  ;;  %v1894_v51 = vpop.f32.mrb[31].mxu1  ;;  %v1947_v30 = vpop.f32.mrb[31].mxu0  ;;  %v5708_v25 = vrot.slane %v5688_v28, %v1622_v38  ;;  %v1970_v26 = vmax.f32 %v1889_v44, 0.0 }
 0xcaf   :  { %v1895_v19 = vadd.f32 %v1894_v51, %v1631_v41  ;;  %v1948_v29 = vadd.f32 %v1947_v30, %v1639_v42  ;;  %v1972_v31 = vmax.f32 %v1942_v62, 0.0  ;;  %v1971_v56 = vmax.f32 %v1891_v45, 0.0 }
 0xcb0   :  { %v1978_v21 = vmax.f32 %v1893_v49, 0.0  ;;  %v1980_v36 = vmax.f32 %v1946_v50, 0.0  ;;  %v1973_v18 = vmax.f32 %v1944_v32, 0.0 }
 0xcb1   :  { %v1979_v33 = vmax.f32 %v1895_v19, 0.0  ;;  %v1981_v57 = vmax.f32 %v1948_v29, 0.0 }
 0xcb2   :  { %v5710_v41 = vpack.c.bf16 %v1978_v21, %v1970_v26  ;;  %v5712_v42 = vpack.c.bf16 %v1980_v36, %v1972_v31 }
 0xcb3   :  { %v5714_v55 = vpack.c.bf16 %v1979_v33, %v1971_v56  ;;  %v5716_v37 = vpack.c.bf16 %v1981_v57, %v1973_v18  ;;  %v2299_v7 = vpop.f32.mrb[32].mxu1  ;;  %v2352_v8 = vpop.f32.mrb[32].mxu0  ;;  %v4926_v56 = vld [vmem:[%s6124_s7 + $0x300] sm:$0xff]  }
 0xcb4   :  { %v2300_v38 = vadd.f32 %v2299_v7, %v5693_v52  ;;  %v2353_v9 = vadd.f32 %v2352_v8, %v5698_v53  ;;  %v2301_v11 = vpop.f32.mrb[33].mxu1  ;;  %v2354_v2 = vpop.f32.mrb[33].mxu0  ;;  %v4927_v18 = vld [vmem:[%s6124_s7 + $0x380] sm:$0xff]  }
 0xcb5   :  { %v2302_v58 = vadd.f32 %v2301_v11, %v5703_v54  ;;  %v2355_v12 = vadd.f32 %v2354_v2, %v5708_v25  ;;  %v2303_v13 = vpop.f32.mrb[34].mxu1  ;;  %v2356_v43 = vpop.f32.mrb[34].mxu0  ;;  %v5743_v11 = vrot.slane %v5688_v28, %v1626_v35 }
 0xcb6   :  { %v2304_v24 = vadd.f32 %v2303_v13, %v5693_v52  ;;  %v2357_v27 = vadd.f32 %v2356_v43, %v5698_v53  ;;  %v2305_v44 = vpop.f32.mrb[35].mxu1  ;;  %v2358_v62 = vpop.f32.mrb[35].mxu0  ;;  %v2477_v45 = vmax.f32 %v2300_v38, 0.0  ;;  %v2479_v32 = vmax.f32 %v2353_v9, 0.0  ;;  %v4928_v38 = vld [vmem:[%s6124_s7 + $0x348] sm:$0xff]  }
 0xcb7   :  { %v2306_v39 = vadd.f32 %v2305_v44, %v5703_v54  ;;  %v2359_v40 = vadd.f32 %v2358_v62, %v5708_v25  ;;  %v2478_v49 = vmax.f32 %v2302_v58, 0.0  ;;  %v2480_v50 = vmax.f32 %v2355_v12, 0.0  ;;  %v4929_v9 = vld [vmem:[%s6124_s7 + $0x3c8] sm:$0xff]  }
 0xcb8   :  { %v2485_v63 = vmax.f32 %v2304_v24, 0.0  ;;  %v2487_v47 = vmax.f32 %v2357_v27, 0.0  ;;  %v5750_v43 = vrot.slane %v5688_v28, %v1634_v10  ;;  %v5757_v62 = vrot.slane %v5688_v28, %v1630_v3  ;;  %v4930_v10 = vld [vmem:[%s6124_s7 + $0x308] sm:$0xff]  }
 0xcb9   :  { %v2486_v51 = vmax.f32 %v2306_v39, 0.0  ;;  %v2488_v30 = vmax.f32 %v2359_v40, 0.0 }
 0xcba   :  { %v2509_v19 = vpack.c.bf16 %v2485_v63, %v2477_v45  ;;  %v2511_v29 = vpack.c.bf16 %v2487_v47, %v2479_v32  ;;  %v4933_v63 = vld [vmem:[%s6124_s7 + $0x3d0] sm:$0xff]  }
 0xcbb   :  { %v2510_v26 = vpack.c.bf16 %v2486_v51, %v2478_v49  ;;  %v2512_v31 = vpack.c.bf16 %v2488_v30, %v2480_v50  ;;  %v2309_v21 = vpop.f32.mrb[36].mxu1  ;;  %v2362_v36 = vpop.f32.mrb[36].mxu0 }
 0xcbc   :  { %v2310_v33 = vadd.f32 %v2309_v21, %v5693_v52  ;;  %v2363_v57 = vadd.f32 %v2362_v36, %v5698_v53  ;;  %v2311_v7 = vpop.f32.mrb[37].mxu1  ;;  %v2364_v8 = vpop.f32.mrb[37].mxu0 }
 0xcbd   :  { %v2312_v2 = vadd.f32 %v2311_v7, %v5703_v54  ;;  %v2365_v58 = vadd.f32 %v2364_v8, %v5708_v25  ;;  %v2313_v12 = vpop.f32.mrb[38].mxu1  ;;  %v2366_v13 = vpop.f32.mrb[38].mxu0  ;;  %3070 = vmatprep.mubr.bf16.mxu1 %v2510_v26  ;;  %3119 = vmatprep.mubr.bf16.mxu0 %v2512_v31  ;;  %v4934_v26 = vld [vmem:[%s6124_s7 + $0x310] sm:$0xff]  }
 0xcbe   :  { %v2314_v24 = vadd.f32 %v2313_v12, %v5693_v52  ;;  %v2367_v27 = vadd.f32 %v2366_v13, %v5698_v53  ;;  %v2315_v44 = vpop.f32.mrb[39].mxu1  ;;  %v2368_v35 = vpop.f32.mrb[39].mxu0  ;;  %3071 = vmatmul.mubr.bf16.vlgmr.msra.gmra.mrb[48].mxu1 %v2509_v19  ;;  %3120 = vmatmul.mubr.bf16.vlgmr.msra.gmra.mrb[48].mxu0 %v2511_v29  ;;  %v4931_v52 = vld [vmem:[%s6124_s7 + $0x388] sm:$0xff]   ;;  %v5770_v53 = vrot.slane %v5688_v28, %v1638_v4  ;;  %v2493_v3 = vmax.f32 %v2310_v33, 0.0  ;;  %v4935_v31 = vld [vmem:[%s6124_s7 + $0x390] sm:$0xff]   ;;  %v4936_v33 = vld [vmem:[%s6124_s7 + $0x358] sm:$0xff]  }
 0xcbf   :  { %v2316_v39 = vadd.f32 %v2315_v44, %v5703_v54  ;;  %v2369_v40 = vadd.f32 %v2368_v35, %v5708_v25  ;;  %4452 = vmatpush3.bf16.msra.mxu1 %v4926_v56  ;;  %4480 = vmatpush3.bf16.msra.mxu0 %v4927_v18  ;;  %v2495_v45 = vmax.f32 %v2363_v57, 0.0  ;;  %v4932_v25 = vld [vmem:[%s6124_s7 + $0x350] sm:$0xff]   ;;  %v2494_v47 = vmax.f32 %v2312_v2, 0.0  ;;  %v4937_v57 = vld [vmem:[%s6124_s7 + $0x3d8] sm:$0xff]  }
 0xcc0   :  { %v2501_v54 = vmax.f32 %v2314_v24, 0.0  ;;  %v2503_v32 = vmax.f32 %v2367_v27, 0.0  ;;  %4453 = vmatprep.subr.bf16.mxu1 %v4928_v38  ;;  %4481 = vmatprep.subr.bf16.mxu0 %v4929_v9  ;;  %v2496_v49 = vmax.f32 %v2365_v58, 0.0  ;;  %v4938_v44 = vld [vmem:[%s6124_s7 + $0x318] sm:$0xff]  }
 0xcc1   :  { %v2502_v34 = vmax.f32 %v2316_v39, 0.0  ;;  %v2504_v50 = vmax.f32 %v2369_v40, 0.0  ;;  %v4939_v35 = vld [vmem:[%s6124_s7 + $0x398] sm:$0xff]  }
 0xcc2   :  { %v2517_v4 = vpack.c.bf16 %v2501_v54, %v2493_v3  ;;  %v2519_v28 = vpack.c.bf16 %v2503_v32, %v2495_v45  ;;  %v4940_v3 = vld [vmem:[%s6124_s7 + $0x360] sm:$0xff]  }
 0xcc3   :  { %v2518_v51 = vpack.c.bf16 %v2502_v34, %v2494_v47  ;;  %v2520_v30 = vpack.c.bf16 %v2504_v50, %v2496_v49  ;;  %4454 = vmatpush3.bf16.msra.mxu1 %v4930_v10  ;;  %4482 = vmatpush3.bf16.msra.mxu0 %v4931_v52  ;;  %v2405_v19 = vpop.f32.mrb[40].mxu1  ;;  %v2458_v29 = vpop.f32.mrb[40].mxu0  ;;  %v4941_v45 = vld [vmem:[%s6124_s7 + $0x3e0] sm:$0xff]  }
 0xcc4   :  { %v2406_v21 = vadd.f32 %v2405_v19, %v5743_v11  ;;  %v2459_v36 = vadd.f32 %v2458_v29, %v5750_v43  ;;  %v2407_v56 = vpop.f32.mrb[41].mxu1  ;;  %v2460_v18 = vpop.f32.mrb[41].mxu0  ;;  %4455 = vmatprep.subr.bf16.mxu1 %v4932_v25  ;;  %4483 = vmatprep.subr.bf16.mxu0 %v4933_v63 }
 0xcc5   :  { %v2408_v7 = vadd.f32 %v2407_v56, %v5757_v62  ;;  %v2461_v8 = vadd.f32 %v2460_v18, %v5770_v53  ;;  %v2409_v38 = vpop.f32.mrb[42].mxu1  ;;  %v2462_v9 = vpop.f32.mrb[42].mxu0  ;;  %3078 = vmatprep.mubr.bf16.mxu1 %v2518_v51  ;;  %3127 = vmatprep.mubr.bf16.mxu0 %v2520_v30  ;;  %v4942_v51 = vld [vmem:[%s6124_s7 + $0x320] sm:$0xff]  }
 0xcc6   :  { %v2410_v2 = vadd.f32 %v2409_v38, %v5743_v11  ;;  %v2463_v58 = vadd.f32 %v2462_v9, %v5750_v43  ;;  %v2411_v12 = vpop.f32.mrb[43].mxu1  ;;  %v2464_v13 = vpop.f32.mrb[43].mxu0  ;;  %3079 = vmatmul.mubr.bf16.gmra.mrb[52].mxu1 %v2517_v4  ;;  %3128 = vmatmul.mubr.bf16.gmra.mrb[52].mxu0 %v2519_v28  ;;  %v2481_v39 = vmax.f32 %v2406_v21, 0.0  ;;  %v2483_v40 = vmax.f32 %v2459_v36, 0.0  ;;  %v4943_v30 = vld [vmem:[%s6124_s7 + $0x3a0] sm:$0xff]   ;;  %v4944_v21 = vld [vmem:[%s6124_s7 + $0x368] sm:$0xff]  }
 0xcc7   :  { %v2412_v24 = vadd.f32 %v2411_v12, %v5757_v62  ;;  %v2465_v27 = vadd.f32 %v2464_v13, %v5770_v53  ;;  %4456 = vmatpush3.bf16.msra.mxu1 %v4934_v26  ;;  %4484 = vmatpush3.bf16.msra.mxu0 %v4935_v31  ;;  %v2482_v54 = vmax.f32 %v2408_v7, 0.0  ;;  %v2484_v32 = vmax.f32 %v2461_v8, 0.0  ;;  %v4945_v36 = vld [vmem:[%s6124_s7 + $0x3e8] sm:$0xff]  }
 0xcc8   :  { %v2489_v10 = vmax.f32 %v2410_v2, 0.0  ;;  %v2491_v52 = vmax.f32 %v2463_v58, 0.0  ;;  %4457 = vmatprep.subr.bf16.mxu1 %v4936_v33  ;;  %4485 = vmatprep.subr.bf16.mxu0 %v4937_v57  ;;  %v4946_v12 = vld [vmem:[%s6124_s7 + $0x328] sm:$0xff]  }
 0xcc9   :  { %v2490_v25 = vmax.f32 %v2412_v24, 0.0  ;;  %v2492_v63 = vmax.f32 %v2465_v27, 0.0  ;;  %v4947_v13 = vld [vmem:[%s6124_s7 + $0x3a8] sm:$0xff]  }
 0xcca   :  { %v5810_v47 = vpack.c.bf16 %v2489_v10, %v2481_v39  ;;  %v5812_v49 = vpack.c.bf16 %v2491_v52, %v2483_v40 }
 0xccb   :  { %v2514_v34 = vpack.c.bf16 %v2490_v25, %v2482_v54  ;;  %v2516_v50 = vpack.c.bf16 %v2492_v63, %v2484_v32  ;;  %4458 = vmatpush3.bf16.msra.mxu1 %v4938_v44  ;;  %4486 = vmatpush3.bf16.msra.mxu0 %v4939_v35  ;;  %v2415_v4 = vpop.f32.mrb[44].mxu1  ;;  %v2468_v28 = vpop.f32.mrb[44].mxu0  ;;  %v4950_v54 = vld [vmem:[%s6124_s7 + $0x330] sm:$0xff]   ;;  %v4952_v25 = vld [vmem:[%s6124_s7 + $0x378] sm:$0xff]  }
 0xccc   :  { %v2416_v19 = vadd.f32 %v2415_v4, %v5743_v11  ;;  %v2469_v29 = vadd.f32 %v2468_v28, %v5750_v43  ;;  %v2417_v26 = vpop.f32.mrb[45].mxu1  ;;  %v2470_v31 = vpop.f32.mrb[45].mxu0  ;;  %4459 = vmatprep.subr.bf16.mxu1 %v4940_v3  ;;  %4487 = vmatprep.subr.bf16.mxu0 %v4941_v45  ;;  %v4951_v32 = vld [vmem:[%s6124_s7 + $0x3b0] sm:$0xff]   ;;  %v4953_v63 = vld [vmem:[%s6124_s7 + $0x3f8] sm:$0xff]   ;;  %v4956_v4 = vld [vmem:[%s6124_s7 + $0x40] sm:$0xff]  }
 0xccd   :  { %v2418_v56 = vadd.f32 %v2417_v26, %v5757_v62  ;;  %v2471_v18 = vadd.f32 %v2470_v31, %v5770_v53  ;;  %v2419_v33 = vpop.f32.mrb[46].mxu1  ;;  %v2472_v57 = vpop.f32.mrb[46].mxu0  ;;  %3168 = vmatprep.mubr.bf16.mxu1 %v2514_v34  ;;  %3217 = vmatprep.mubr.bf16.mxu0 %v2516_v50  ;;  %v4954_v34 = vld [vmem:[%s6124_s7 + $0x338] sm:$0xff]   ;;  %v4957_v28 = vld [vmem:[%s6124_s7 + $0xc0] sm:$0xff]   ;;  %v4962_v26 = vld [vmem:[%s6124_s7 + $0x8] sm:$0xff]  }
 0xcce   :  { %v2420_v7 = vadd.f32 %v2419_v33, %v5743_v11  ;;  %v2473_v8 = vadd.f32 %v2472_v57, %v5750_v43  ;;  %v2421_v38 = vpop.f32.mrb[47].mxu1  ;;  %v2474_v9 = vpop.f32.mrb[47].mxu0  ;;  %v2497_v24 = vmax.f32 %v2416_v19, 0.0  ;;  %v2499_v11 = vmax.f32 %v2469_v29, 0.0  ;;  %v4955_v50 = vld [vmem:[%s6124_s7 + $0x3b8] sm:$0xff]   ;;  %v4960_v19 = vld [vmem:[%s6124_s7 + $0x48] sm:$0xff]  }
 0xccf   :  { %v2422_v2 = vadd.f32 %v2421_v38, %v5757_v62  ;;  %v2475_v58 = vadd.f32 %v2474_v9, %v5770_v53  ;;  %4460 = vmatpush3.bf16.msra.mxu1 %v4942_v51  ;;  %4488 = vmatpush3.bf16.msra.mxu0 %v4943_v30  ;;  %v4948_v62 = vld [vmem:[%s6124_s7 + $0x370] sm:$0xff]   ;;  %v2498_v44 = vmax.f32 %v2418_v56, 0.0  ;;  %v2500_v35 = vmax.f32 %v2471_v18, 0.0  ;;  %v4958_v51 = vld [vmem:[%s6124_s7] sm:$0xff]   ;;  %v4961_v29 = vld [vmem:[%s6124_s7 + $0xc8] sm:$0xff]  }
 0xcd0   :  { %v2505_v27 = vmax.f32 %v2420_v7, 0.0  ;;  %v2507_v43 = vmax.f32 %v2473_v8, 0.0  ;;  %4461 = vmatprep.subr.bf16.mxu1 %v4944_v21  ;;  %4489 = vmatprep.subr.bf16.mxu0 %v4945_v36  ;;  %v4949_v53 = vld [vmem:[%s6124_s7 + $0x3f0] sm:$0xff]   ;;  %v4959_v30 = vld [vmem:[%s6124_s7 + $0x80] sm:$0xff]   ;;  %v4963_v31 = vld [vmem:[%s6124_s7 + $0x88] sm:$0xff]  }
 0xcd1   :  { %v2506_v39 = vmax.f32 %v2422_v2, 0.0  ;;  %v2508_v40 = vmax.f32 %v2475_v58, 0.0  ;;  %v4966_v21 = vld [vmem:[%s6124_s7 + $0x10] sm:$0xff]   ;;  %v4968_v56 = vld [vmem:[%s6124_s7 + $0x58] sm:$0xff]   ;;  %v4972_v7 = vld [vmem:[%s6124_s7 + $0x60] sm:$0xff]  }
 0xcd2   :  { %v2521_v10 = vpack.c.bf16 %v2505_v27, %v2497_v24  ;;  %v2523_v52 = vpack.c.bf16 %v2507_v43, %v2499_v11  ;;  %v4967_v36 = vld [vmem:[%s6124_s7 + $0x90] sm:$0xff]   ;;  %v4969_v18 = vld [vmem:[%s6124_s7 + $0xd8] sm:$0xff]   ;;  %v4975_v8 = vld [vmem:[%s6124_s7 + $0xa0] sm:$0xff]  }
 0xcd3   :  { %v2522_v3 = vpack.c.bf16 %v2506_v39, %v2498_v44  ;;  %v2524_v45 = vpack.c.bf16 %v2508_v40, %v2500_v35  ;;  %4462 = vmatpush3.bf16.msra.mxu1 %v4946_v12  ;;  %4490 = vmatpush3.bf16.msra.mxu0 %v4947_v13  ;;  %v4970_v33 = vld [vmem:[%s6124_s7 + $0x18] sm:$0xff]   ;;  %v4976_v38 = vld [vmem:[%s6124_s7 + $0x68] sm:$0xff]   ;;  %v4980_v12 = vld [vmem:[%s6124_s7 + $0x70] sm:$0xff]  }
 0xcd4   :  { %4463 = vmatprep.subr.bf16.mxu1 %v4948_v62  ;;  %4491 = vmatprep.subr.bf16.mxu0 %v4949_v53  ;;  %v4971_v57 = vld [vmem:[%s6124_s7 + $0x98] sm:$0xff]   ;;  %v4977_v9 = vld [vmem:[%s6124_s7 + $0xe8] sm:$0xff]   ;;  %v4981_v13 = vld [vmem:[%s6124_s7 + $0xf0] sm:$0xff]  }
 0xcd5   :  { %v4978_v2 = vld [vmem:[%s6124_s7 + $0x28] sm:$0xff]   ;;  %v4982_v24 = vld [vmem:[%s6124_s7 + $0x30] sm:$0xff]   ;;  %v4984_v27 = vld [vmem:[%s6124_s7 + $0x78] sm:$0xff]  }
 0xcd6   :  { %v4979_v58 = vld [vmem:[%s6124_s7 + $0xa8] sm:$0xff]   ;;  %v4983_v11 = vld [vmem:[%s6124_s7 + $0xb0] sm:$0xff]   ;;  %v4985_v43 = vld [vmem:[%s6124_s7 + $0xf8] sm:$0xff]  }
 0xcd7   :  { %4464 = vmatpush3.bf16.msra.mxu1 %v4950_v54  ;;  %4492 = vmatpush3.bf16.msra.mxu0 %v4951_v32  ;;  %v4986_v62 = vld [vmem:[%s6124_s7 + $0x38] sm:$0xff]   ;;  %v4988_v44 = vld [vmem:[%s6124_s7 + $0x140] sm:$0xff]  }
 0xcd8   :  { %4465 = vmatprep.subr.bf16.mxu1 %v4952_v25  ;;  %4493 = vmatprep.subr.bf16.mxu0 %v4953_v63  ;;  %v4987_v53 = vld [vmem:[%s6124_s7 + $0xb8] sm:$0xff]   ;;  %v4989_v35 = vld [vmem:[%s6124_s7 + $0x1c0] sm:$0xff]  }
 0xcd9   :  { %v4990_v39 = vld [vmem:[%s6124_s7 + $0x100] sm:$0xff]   ;;  %v5000_v54 = vld [vmem:[%s6124_s7 + $0x158] sm:$0xff]  }
 0xcda   :  { %v4991_v40 = vld [vmem:[%s6124_s7 + $0x180] sm:$0xff]   ;;  %v5001_v32 = vld [vmem:[%s6124_s7 + $0x1d8] sm:$0xff]  }
 0xcdb   :  { %4466 = vmatpush3.bf16.msra.mxu1 %v4954_v34  ;;  %4494 = vmatpush3.bf16.msra.mxu0 %v4955_v50  ;;  %v5002_v25 = vld [vmem:[%s6124_s7 + $0x118] sm:$0xff]   ;;  %v5008_v34 = vld [vmem:[%s6124_s7 + $0x168] sm:$0xff]  }
 0xcdc   :  { %4507 = vmatprep.subr.bf16.mxu1 %v4956_v4  ;;  %4535 = vmatprep.subr.bf16.mxu0 %v4957_v28  ;;  %v5003_v63 = vld [vmem:[%s6124_s7 + $0x198] sm:$0xff]   ;;  %v5009_v50 = vld [vmem:[%s6124_s7 + $0x1e8] sm:$0xff]  }
 0xcdd   :  { %v5010_v4 = vld [vmem:[%s6124_s7 + $0x128] sm:$0xff]  }
 0xcde   :  { %3169 = vmatmul.mubr.bf16.vlgmr.msra.gmra.mrb[56].mxu1 %v5810_v47  ;;  %3218 = vmatmul.mubr.bf16.vlgmr.msra.gmra.mrb[56].mxu0 %v5812_v49  ;;  %v4964_v47 = vld [vmem:[%s6124_s7 + $0x50] sm:$0xff]   ;;  %v5011_v28 = vld [vmem:[%s6124_s7 + $0x1a8] sm:$0xff]  }
 0xcdf   :  { %3176 = vmatprep.mubr.bf16.mxu1 %v2522_v3  ;;  %3225 = vmatprep.mubr.bf16.mxu0 %v2524_v45  ;;  %v4965_v49 = vld [vmem:[%s6124_s7 + $0xd0] sm:$0xff]   ;;  %v4994_v3 = vld [vmem:[%s6124_s7 + $0x108] sm:$0xff]  }
 0xce0   :  { %4508 = vmatpush3.bf16.msra.mxu1 %v4958_v51  ;;  %4536 = vmatpush3.bf16.msra.mxu0 %v4959_v30  ;;  %v4995_v45 = vld [vmem:[%s6124_s7 + $0x188] sm:$0xff]   ;;  %v5012_v51 = vld [vmem:[%s6124_s7 + $0x170] sm:$0xff]  }
 0xce1   :  { %4509 = vmatprep.subr.bf16.mxu1 %v4960_v19  ;;  %4537 = vmatprep.subr.bf16.mxu0 %v4961_v29  ;;  %v5013_v30 = vld [vmem:[%s6124_s7 + $0x1f0] sm:$0xff]  }
 0xce2   :  { %v5014_v19 = vld [vmem:[%s6124_s7 + $0x130] sm:$0xff]  }
 0xce3   :  { %v5015_v29 = vld [vmem:[%s6124_s7 + $0x1b0] sm:$0xff]  }
 0xce4   :  { %4510 = vmatpush3.bf16.msra.mxu1 %v4962_v26  ;;  %4538 = vmatpush3.bf16.msra.mxu0 %v4963_v31  ;;  %v5016_v26 = vld [vmem:[%s6124_s7 + $0x178] sm:$0xff]  }
 0xce5   :  { %4511 = vmatprep.subr.bf16.mxu1 %v4964_v47  ;;  %4539 = vmatprep.subr.bf16.mxu0 %v4965_v49  ;;  %v5017_v31 = vld [vmem:[%s6124_s7 + $0x1f8] sm:$0xff]  }
 0xce6   :  { %3177 = vmatmul.mubr.bf16.gmra.mrb[60].mxu1 %v2521_v10  ;;  %3226 = vmatmul.mubr.bf16.gmra.mrb[60].mxu0 %v2523_v52  ;;  %v4992_v10 = vld [vmem:[%s6124_s7 + $0x148] sm:$0xff]   ;;  %v5018_v47 = vld [vmem:[%s6124_s7 + $0x138] sm:$0xff]  }
 0xce7   :  { %3650 = vmatprep.mubr.bf16.mxu1 %v5657_v5  ;;  %3699 = vmatprep.mubr.bf16.mxu0 %v5659_v6  ;;  %v4973_v5 = vld [vmem:[%s6124_s7 + $0xe0] sm:$0xff]   ;;  %v4993_v52 = vld [vmem:[%s6124_s7 + $0x1c8] sm:$0xff]   ;;  %v5019_v49 = vld [vmem:[%s6124_s7 + $0x1b8] sm:$0xff]  }
 0xce8   :  { %4512 = vmatpush3.bf16.msra.mxu1 %v4966_v21  ;;  %4540 = vmatpush3.bf16.msra.mxu0 %v4967_v36  ;;  %v4974_v6 = vld [vmem:[%s6124_s7 + $0x20] sm:$0xff]  }
 0xce9   :  { %4513 = vmatprep.subr.bf16.mxu1 %v4968_v56  ;;  %4541 = vmatprep.subr.bf16.mxu0 %v4969_v18 }
 0xcec   :  { %4514 = vmatpush3.bf16.msra.mxu1 %v4970_v33  ;;  %4542 = vmatpush3.bf16.msra.mxu0 %v4971_v57 }
 0xced   :  { %4515 = vmatprep.subr.bf16.mxu1 %v4972_v7  ;;  %4543 = vmatprep.subr.bf16.mxu0 %v4973_v5 }
 0xcf0   :  { %4516 = vmatpush3.bf16.msra.mxu1 %v4974_v6  ;;  %4544 = vmatpush3.bf16.msra.mxu0 %v4975_v8 }
 0xcf1   :  { %4517 = vmatprep.subr.bf16.mxu1 %v4976_v38  ;;  %4545 = vmatprep.subr.bf16.mxu0 %v4977_v9 }
 0xcf4   :  { %4518 = vmatpush3.bf16.msra.mxu1 %v4978_v2  ;;  %4546 = vmatpush3.bf16.msra.mxu0 %v4979_v58 }
 0xcf5   :  { %4519 = vmatprep.subr.bf16.mxu1 %v4980_v12  ;;  %4547 = vmatprep.subr.bf16.mxu0 %v4981_v13 }
 0xcf8   :  { %4520 = vmatpush3.bf16.msra.mxu1 %v4982_v24  ;;  %4548 = vmatpush3.bf16.msra.mxu0 %v4983_v11 }
 0xcf9   :  { %4521 = vmatprep.subr.bf16.mxu1 %v4984_v27  ;;  %4549 = vmatprep.subr.bf16.mxu0 %v4985_v43 }
 0xcfc   :  { %4522 = vmatpush3.bf16.msra.mxu1 %v4986_v62  ;;  %4550 = vmatpush3.bf16.msra.mxu0 %v4987_v53 }
 0xcfd   :  { %4563 = vmatprep.subr.bf16.mxu1 %v4988_v44  ;;  %4591 = vmatprep.subr.bf16.mxu0 %v4989_v35 }
 0xcff   :  { %3651 = vmatmul.mubr.bf16.vlgmr.msra.gmra.mrb[64].mxu1 %v5651_v59  ;;  %3700 = vmatmul.mubr.bf16.vlgmr.msra.gmra.mrb[64].mxu0 %v5653_v1  ;;  %v4996_v59 = vld [vmem:[%s6124_s7 + $0x150] sm:$0xff]  }
 0xd00   :  { %3658 = vmatprep.mubr.bf16.mxu1 %v5673_v60  ;;  %3707 = vmatprep.mubr.bf16.mxu0 %v5675_v61  ;;  %v4997_v1 = vld [vmem:[%s6124_s7 + $0x1d0] sm:$0xff]  }
 0xd01   :  { %4564 = vmatpush3.bf16.msra.mxu1 %v4990_v39  ;;  %4592 = vmatpush3.bf16.msra.mxu0 %v4991_v40  ;;  %v4998_v60 = vld [vmem:[%s6124_s7 + $0x110] sm:$0xff]  }
 0xd02   :  { %4565 = vmatprep.subr.bf16.mxu1 %v4992_v10  ;;  %4593 = vmatprep.subr.bf16.mxu0 %v4993_v52  ;;  %v4999_v61 = vld [vmem:[%s6124_s7 + $0x190] sm:$0xff]  }
 0xd05   :  { %4566 = vmatpush3.bf16.msra.mxu1 %v4994_v3  ;;  %4594 = vmatpush3.bf16.msra.mxu0 %v4995_v45 }
 0xd06   :  { %4567 = vmatprep.subr.bf16.mxu1 %v4996_v59  ;;  %4595 = vmatprep.subr.bf16.mxu0 %v4997_v1 }
 0xd07   :  { %3659 = vmatmul.mubr.bf16.gmra.mrb[68].mxu1 %v5669_v48  ;;  %3708 = vmatmul.mubr.bf16.gmra.mrb[68].mxu0 %v5671_v46  ;;  %v5004_v48 = vld [vmem:[%s6124_s7 + $0x160] sm:$0xff]  }
 0xd08   :  { %3748 = vmatprep.mubr.bf16.mxu1 %v5681_v22  ;;  %3797 = vmatprep.mubr.bf16.mxu0 %v5683_v23  ;;  %v5005_v46 = vld [vmem:[%s6124_s7 + $0x1e0] sm:$0xff]  }
 0xd09   :  { %4568 = vmatpush3.bf16.msra.mxu1 %v4998_v60  ;;  %4596 = vmatpush3.bf16.msra.mxu0 %v4999_v61  ;;  %v5006_v22 = vld [vmem:[%s6124_s7 + $0x120] sm:$0xff]  }
 0xd0a   :  { %4569 = vmatprep.subr.bf16.mxu1 %v5000_v54  ;;  %4597 = vmatprep.subr.bf16.mxu0 %v5001_v32  ;;  %v5007_v23 = vld [vmem:[%s6124_s7 + $0x1a0] sm:$0xff]  }
 0xd0d   :  { %4570 = vmatpush3.bf16.msra.mxu1 %v5002_v25  ;;  %4598 = vmatpush3.bf16.msra.mxu0 %v5003_v63 }
 0xd0e   :  { %4571 = vmatprep.subr.bf16.mxu1 %v5004_v48  ;;  %4599 = vmatprep.subr.bf16.mxu0 %v5005_v46 }
 0xd11   :  { %4572 = vmatpush3.bf16.msra.mxu1 %v5006_v22  ;;  %4600 = vmatpush3.bf16.msra.mxu0 %v5007_v23 }
 0xd12   :  { %4573 = vmatprep.subr.bf16.mxu1 %v5008_v34  ;;  %4601 = vmatprep.subr.bf16.mxu0 %v5009_v50 }
 0xd15   :  { %4574 = vmatpush3.bf16.msra.mxu1 %v5010_v4  ;;  %4602 = vmatpush3.bf16.msra.mxu0 %v5011_v28 }
 0xd16   :  { %4575 = vmatprep.subr.bf16.mxu1 %v5012_v51  ;;  %4603 = vmatprep.subr.bf16.mxu0 %v5013_v30 }
 0xd19   :  { %4576 = vmatpush3.bf16.msra.mxu1 %v5014_v19  ;;  %4604 = vmatpush3.bf16.msra.mxu0 %v5015_v29 }
 0xd1a   :  { %4577 = vmatprep.subr.bf16.mxu1 %v5016_v26  ;;  %4605 = vmatprep.subr.bf16.mxu0 %v5017_v31 }
 0xd1d   :  { %4578 = vmatpush3.bf16.msra.mxu1 %v5018_v47  ;;  %4606 = vmatpush3.bf16.msra.mxu0 %v5019_v49 }
 0xd20   :  { %3749 = vmatmul.mubr.bf16.vlgmr.msra.gmra.mrb[72].mxu1 %v5677_v14  ;;  %3798 = vmatmul.mubr.bf16.vlgmr.msra.gmra.mrb[72].mxu0 %v5679_v15 }
 0xd21   :  { %3756 = vmatprep.mubr.bf16.mxu1 %v5714_v55  ;;  %3805 = vmatprep.mubr.bf16.mxu0 %v5716_v37 }
 0xd28   :  { %3757 = vmatmul.mubr.bf16.gmra.mrb[76].mxu1 %v5710_v41  ;;  %3806 = vmatmul.mubr.bf16.gmra.mrb[76].mxu0 %v5712_v42 }
 0xd91   :  { %v4411_v21 = vpop.f32.mrb[48].mxu1  ;;  %v4439_v36 = vpop.f32.mrb[48].mxu0 }
 0xd92   :  { %v4412_v56 = vpop.f32.mrb[49].mxu1  ;;  %v4440_v18 = vpop.f32.mrb[49].mxu0 }
 0xd93   :  { %v4413_v33 = vadd.f32 %v4412_v56, %v4411_v21  ;;  %v4441_v57 = vadd.f32 %v4440_v18, %v4439_v36  ;;  %v4414_v7 = vpop.f32.mrb[50].mxu1  ;;  %v4442_v5 = vpop.f32.mrb[50].mxu0 }
 0xd94   :  { %v4415_v6 = vpop.f32.mrb[51].mxu1  ;;  %v4443_v14 = vpop.f32.mrb[51].mxu0 }
 0xd95   :  { %v3122_v8 = vadd.f32 %v4441_v57, %v4413_v33  ;;  %v4416_v15 = vadd.f32 %v4415_v6, %v4414_v7  ;;  %v4444_v38 = vadd.f32 %v4443_v14, %v4442_v5 }
 0xd97   :  { %v3125_v55 = vadd.f32 %v4444_v38, %v4416_v15 }
 0xd99   :  { %v4417_v9 = vpop.f32.mrb[52].mxu1  ;;  %v4445_v37 = vpop.f32.mrb[52].mxu0 }
 0xd9a   :  { %v4418_v2 = vpop.f32.mrb[53].mxu1  ;;  %v4446_v41 = vpop.f32.mrb[53].mxu0 }
 0xd9b   :  { %v4419_v58 = vadd.f32 %v4418_v2, %v4417_v9  ;;  %v4447_v42 = vadd.f32 %v4446_v41, %v4445_v37  ;;  %v4420_v12 = vpop.f32.mrb[54].mxu1  ;;  %v4448_v13 = vpop.f32.mrb[54].mxu0 }
 0xd9c   :  { %v4421_v24 = vpop.f32.mrb[55].mxu1  ;;  %v4449_v11 = vpop.f32.mrb[55].mxu0 }
 0xd9d   :  { %v3130_v27 = vadd.f32 %v4447_v42, %v4419_v58  ;;  %v4422_v43 = vadd.f32 %v4421_v24, %v4420_v12  ;;  %v4450_v62 = vadd.f32 %v4449_v11, %v4448_v13 }
 0xd9f   :  { %v3133_v53 = vadd.f32 %v4450_v62, %v4422_v43 }
 0xdb1   :  { %v4467_v44 = vpop.f32.mrb[56].mxu1  ;;  %v4495_v35 = vpop.f32.mrb[56].mxu0 }
 0xdb2   :  { %v4468_v39 = vpop.f32.mrb[57].mxu1  ;;  %v4496_v40 = vpop.f32.mrb[57].mxu0 }
 0xdb3   :  { %v4469_v10 = vadd.f32 %v4468_v39, %v4467_v44  ;;  %v4497_v52 = vadd.f32 %v4496_v40, %v4495_v35  ;;  %v4470_v3 = vpop.f32.mrb[58].mxu1  ;;  %v4498_v45 = vpop.f32.mrb[58].mxu0 }
 0xdb4   :  { %v4471_v59 = vpop.f32.mrb[59].mxu1  ;;  %v4499_v1 = vpop.f32.mrb[59].mxu0 }
 0xdb5   :  { %v3171_v60 = vadd.f32 %v4469_v10, %v3122_v8  ;;  %v4472_v61 = vadd.f32 %v4471_v59, %v4470_v3  ;;  %v4500_v54 = vadd.f32 %v4499_v1, %v4498_v45 }
 0xdb7   :  { %v3220_v32 = vadd.f32 %v4497_v52, %v3171_v60  ;;  %v3174_v25 = vadd.f32 %v4472_v61, %v3125_v55 }
 0xdb9   :  { %v3223_v63 = vadd.f32 %v4500_v54, %v3174_v25  ;;  %v4473_v48 = vpop.f32.mrb[60].mxu1  ;;  %v4501_v46 = vpop.f32.mrb[60].mxu0 }
 0xdba   :  { %v4474_v22 = vpop.f32.mrb[61].mxu1  ;;  %v4502_v23 = vpop.f32.mrb[61].mxu0 }
 0xdbb   :  { %v4475_v34 = vadd.f32 %v4474_v22, %v4473_v48  ;;  %v4503_v50 = vadd.f32 %v4502_v23, %v4501_v46  ;;  %v4476_v4 = vpop.f32.mrb[62].mxu1  ;;  %v4504_v28 = vpop.f32.mrb[62].mxu0  ;;  %v4336_v46 = vld [vmem:[%s6122_s8 + $0x1] ss:$0 sm:$0xff] }
 0xdbc   :  { %v4477_v51 = vpop.f32.mrb[63].mxu1  ;;  %v4505_v30 = vpop.f32.mrb[63].mxu0 }
 0xdbd   :  { %v3179_v19 = vadd.f32 %v4475_v34, %v3130_v27  ;;  %v4478_v29 = vadd.f32 %v4477_v51, %v4476_v4  ;;  %v4506_v26 = vadd.f32 %v4505_v30, %v4504_v28 }
 0xdbf   :  { %v3228_v31 = vadd.f32 %v4503_v50, %v3179_v19  ;;  %v3182_v47 = vadd.f32 %v4478_v29, %v3133_v53 }
 0xdc1   :  { %v3231_v49 = vadd.f32 %v4506_v26, %v3182_v47 }
 0xdd2   :  { %v4523_v21 = vpop.f32.mrb[64].mxu1  ;;  %v4551_v36 = vpop.f32.mrb[64].mxu0 }
 0xdd3   :  { %v4524_v56 = vpop.f32.mrb[65].mxu1  ;;  %v4552_v18 = vpop.f32.mrb[65].mxu0 }
 0xdd4   :  { %v4525_v33 = vadd.f32 %v4524_v56, %v4523_v21  ;;  %v4553_v57 = vadd.f32 %v4552_v18, %v4551_v36  ;;  %v4526_v7 = vpop.f32.mrb[66].mxu1  ;;  %v4554_v5 = vpop.f32.mrb[66].mxu0 }
 0xdd5   :  { %v4527_v6 = vpop.f32.mrb[67].mxu1  ;;  %v4555_v14 = vpop.f32.mrb[67].mxu0 }
 0xdd6   :  { %v3653_v8 = vadd.f32 %v4525_v33, %v3220_v32  ;;  %v4528_v15 = vadd.f32 %v4527_v6, %v4526_v7  ;;  %v4556_v38 = vadd.f32 %v4555_v14, %v4554_v5 }
 0xdd8   :  { %v3702_v55 = vadd.f32 %v4553_v57, %v3653_v8  ;;  %v3656_v9 = vadd.f32 %v4528_v15, %v3223_v63 }
 0xdda   :  { %v3705_v37 = vadd.f32 %v4556_v38, %v3656_v9  ;;  %v4529_v2 = vpop.f32.mrb[68].mxu1  ;;  %v4557_v41 = vpop.f32.mrb[68].mxu0 }
 0xddb   :  { %v4530_v58 = vpop.f32.mrb[69].mxu1  ;;  %v4558_v42 = vpop.f32.mrb[69].mxu0 }
 0xddc   :  { %v4531_v12 = vadd.f32 %v4530_v58, %v4529_v2  ;;  %v4559_v13 = vadd.f32 %v4558_v42, %v4557_v41  ;;  %v4532_v24 = vpop.f32.mrb[70].mxu1  ;;  %v4560_v11 = vpop.f32.mrb[70].mxu0 }
 0xddd   :  { %v4533_v27 = vpop.f32.mrb[71].mxu1  ;;  %v4561_v43 = vpop.f32.mrb[71].mxu0 }
 0xdde   :  { %v3661_v62 = vadd.f32 %v4531_v12, %v3228_v31  ;;  %v4534_v53 = vadd.f32 %v4533_v27, %v4532_v24  ;;  %v4562_v44 = vadd.f32 %v4561_v43, %v4560_v11 }
 0xde0   :  { %v3710_v35 = vadd.f32 %v4559_v13, %v3661_v62  ;;  %v3664_v39 = vadd.f32 %v4534_v53, %v3231_v49 }
 0xde2   :  { %v3713_v40 = vadd.f32 %v4562_v44, %v3664_v39 }
 0xdf3   :  { %v4579_v10 = vpop.f32.mrb[72].mxu1  ;;  %v4607_v52 = vpop.f32.mrb[72].mxu0 }
 0xdf4   :  { %v4580_v3 = vpop.f32.mrb[73].mxu1  ;;  %v4608_v45 = vpop.f32.mrb[73].mxu0 }
 0xdf5   :  { %v4581_v59 = vadd.f32 %v4580_v3, %v4579_v10  ;;  %v4609_v1 = vadd.f32 %v4608_v45, %v4607_v52  ;;  %v4582_v60 = vpop.f32.mrb[74].mxu1  ;;  %v4610_v61 = vpop.f32.mrb[74].mxu0 }
 0xdf6   :  { %v4583_v54 = vpop.f32.mrb[75].mxu1  ;;  %v4611_v32 = vpop.f32.mrb[75].mxu0 }
 0xdf7   :  { %v3751_v25 = vadd.f32 %v4581_v59, %v3702_v55  ;;  %v4584_v63 = vadd.f32 %v4583_v54, %v4582_v60  ;;  %v4612_v48 = vadd.f32 %v4611_v32, %v4610_v61 }
 0xdf9   :  { %v3800_v22 = vadd.f32 %v4609_v1, %v3751_v25  ;;  %v3754_v23 = vadd.f32 %v4584_v63, %v3705_v37 }
 0xdfb   :  { %v3803_v34 = vadd.f32 %v4612_v48, %v3754_v23  ;;  %v4585_v50 = vpop.f32.mrb[76].mxu1  ;;  %v4613_v4 = vpop.f32.mrb[76].mxu0  ;;  %v3819_v28 = vadd.f32 %v4336_v46, %v3800_v22  ;;  %v4337_v22 = vld [vmem:[%s6122_s8 + $0x4] ss:$0 sm:$0xff] }
 0xdfc   :  { %v4586_v51 = vpop.f32.mrb[77].mxu1  ;;  %v4614_v30 = vpop.f32.mrb[77].mxu0 }
 0xdfd   :  { %v4587_v19 = vadd.f32 %v4586_v51, %v4585_v50  ;;  %v4615_v29 = vadd.f32 %v4614_v30, %v4613_v4  ;;  %v4588_v26 = vpop.f32.mrb[78].mxu1  ;;  %v4616_v31 = vpop.f32.mrb[78].mxu0  ;;  %v3823_v47 = vadd.f32 %v3819_v28, %v5418_v0  ;;  %v3820_v49 = vadd.f32 %v4336_v46, %v3803_v34  ;;  %v4338_v34 = vld [vmem:[%s6122_s8 + $0x5] ss:$0 sm:$0xff] }
 0xdfe   :  { %v4589_v21 = vpop.f32.mrb[79].mxu1  ;;  %v4617_v36 = vpop.f32.mrb[79].mxu0 }
 0xdff   :  { %v3759_v56 = vadd.f32 %v4587_v19, %v3710_v35  ;;  %v4590_v18 = vadd.f32 %v4589_v21, %v4588_v26  ;;  %v4618_v33 = vadd.f32 %v4617_v36, %v4616_v31  ;;  %v3827_v57 = vsel %vm130_vm2, %v3823_v47, 0.0 }
 0xe00   :  { %3828 = vadd.xlane.f32.xlu0 %v3827_v57  ;;  %v3824_v7 = vadd.f32 %v3820_v49, %v5420_v20 }
 0xe01   :  { %v3808_v5 = vadd.f32 %v4615_v29, %v3759_v56  ;;  %v3762_v6 = vadd.f32 %v4590_v18, %v3713_v40 }
 0xe02   :  { %v3830_v8 = vsel %vm130_vm2, %v3824_v7, 0.0 }
 0xe03   :  { %v3811_v14 = vadd.f32 %v4618_v33, %v3762_v6  ;;  %v3821_v15 = vadd.f32 %v4336_v46, %v3808_v5 }
 0xe04   :  { %3831 = vadd.xlane.f32.xlu0 %v3830_v8 }
 0xe05   :  { %v3825_v0 = vadd.f32 %v3821_v15, %v5448_v16  ;;  %v3822_v38 = vadd.f32 %v4336_v46, %v3811_v14 }
 0xe07   :  { %v3833_v55 = vsel %vm130_vm2, %v3825_v0, 0.0  ;;  %v3826_v9 = vadd.f32 %v3822_v38, %v5450_v17 }
 0xe08   :  { %3834 = vadd.xlane.f32.xlu1 %v3833_v55 }
 0xe09   :  { %v3836_v37 = vsel %vm130_vm2, %v3826_v9, 0.0 }
 0xe0c   :  { %3837 = vadd.xlane.f32.xlu1 %v3836_v37 }
 0xe8d   :  { %v3829_v2 = vpop.xlane.xlu0 %3828 }
 0xe8e   :  { %v3839_v20 = vmul.f32 0.04761905, %v3829_v2 }
 0xe90   :  { %v3843_v41 = vsub.f32 %v3823_v47, %v3839_v20 }
 0xe91   :  { %v3832_v58 = vpop.xlane.xlu0 %3831 }
 0xe92   :  { %v3840_v42 = vmul.f32 0.04761905, %v3832_v58  ;;  %v3847_v12 = vmul.f32 %v3843_v41, %v3843_v41 }
 0xe94   :  { %v3844_v13 = vsub.f32 %v3824_v7, %v3840_v42  ;;  %v3851_v24 = vsel %vm130_vm2, %v3847_v12, 0.0 }
 0xe95   :  { %3852 = vadd.xlane.f32.xlu0 %v3851_v24  ;;  %v3835_v16 = vpop.xlane.xlu1 %3834 }
 0xe96   :  { %v3841_v11 = vmul.f32 0.04761905, %v3835_v16  ;;  %v3848_v27 = vmul.f32 %v3844_v13, %v3844_v13 }
 0xe98   :  { %v3845_v43 = vsub.f32 %v3825_v0, %v3841_v11  ;;  %v3854_v17 = vsel %vm130_vm2, %v3848_v27, 0.0 }
 0xe99   :  { %3855 = vadd.xlane.f32.xlu0 %v3854_v17  ;;  %v3838_v62 = vpop.xlane.xlu1 %3837 }
 0xe9a   :  { %v3842_v53 = vmul.f32 0.04761905, %v3838_v62  ;;  %v3849_v44 = vmul.f32 %v3845_v43, %v3845_v43 }
 0xe9c   :  { %v3846_v35 = vsub.f32 %v3826_v9, %v3842_v53  ;;  %v3857_v39 = vsel %vm130_vm2, %v3849_v44, 0.0 }
 0xe9d   :  { %3858 = vadd.xlane.f32.xlu1 %v3857_v39 }
 0xe9e   :  { %v3850_v40 = vmul.f32 %v3846_v35, %v3846_v35 }
 0xea0   :  { %v3860_v10 = vsel %vm130_vm2, %v3850_v40, 0.0 }
 0xea1   :  { %3861 = vadd.xlane.f32.xlu1 %v3860_v10 }
 0xf22   :  { %v3853_v52 = vpop.xlane.xlu0 %3852 }
 0xf23   :  { %v3863_v3 = vmul.f32 0.04761905, %v3853_v52 }
 0xf25   :  { %v3867_v45 = vadd.f32 1e-05, %v3863_v3 }
 0xf26   :  { %v3856_v59 = vpop.xlane.xlu0 %3855 }
 0xf27   :  { %5076 = vrsqrt.f32 %v3867_v45  ;;  %v3864_v1 = vmul.f32 0.04761905, %v3856_v59 }
 0xf29   :  { %v3868_v60 = vadd.f32 1e-05, %v3864_v1 }
 0xf2a   :  { %v3859_v61 = vpop.xlane.xlu1 %3858 }
 0xf2b   :  { %5078 = vrsqrt.f32 %v3868_v60  ;;  %v3865_v54 = vmul.f32 0.04761905, %v3859_v61 }
 0xf2d   :  { %v3869_v32 = vadd.f32 1e-05, %v3865_v54 }
 0xf2e   :  { %v3862_v25 = vpop.xlane.xlu1 %3861 }
 0xf2f   :  { %5080 = vrsqrt.f32 %v3869_v32  ;;  %v3866_v63 = vmul.f32 0.04761905, %v3862_v25 }
 0xf31   :  { %v5077_v48 = vpop.eup %5076  ;;  %v3870_v46 = vadd.f32 1e-05, %v3866_v63 }
 0xf32   :  { %v3875_v23 = vmul.f32 %v5077_v48, %v3843_v41 }
 0xf33   :  { %5082 = vrsqrt.f32 %v3870_v46 }
 0xf34   :  { %v3884_v50 = vmul.f32 %v4337_v22, %v3875_v23 }
 0xf35   :  { %v5079_v4 = vpop.eup %5078 }
 0xf36   :  { %v3893_v28 = vadd.f32 %v4338_v34, %v3884_v50  ;;  %v3876_v51 = vmul.f32 %v5079_v4, %v3844_v13 }
 0xf38   :  { %3897 = vxpose.xlu0.b32.start [1/2] (short) (narrow) %v3893_v28, 24  ;;  %v3885_v30 = vmul.f32 %v4337_v22, %v3876_v51 }
 0xf39   :  { %v5081_v19 = vpop.eup %5080 }
 0xf3a   :  { %v3894_v29 = vadd.f32 %v4338_v34, %v3885_v30  ;;  %v3877_v26 = vmul.f32 %v5081_v19, %v3845_v43 }
 0xf3c   :  { %3898 = vxpose.xlu0.b32.end [2/2] (short) (narrow) %v3894_v29, 24  ;;  %v3886_v31 = vmul.f32 %v4337_v22, %v3877_v26 }
 0xf3d   :  { %v5083_v47 = vpop.eup %5082 }
 0xf3e   :  { %v3895_v49 = vadd.f32 %v4338_v34, %v3886_v31  ;;  %v3878_v21 = vmul.f32 %v5083_v47, %v3846_v35 }
 0xf40   :  { %3929 = vxpose.xlu1.b32.start [1/2] (short) (narrow) %v3895_v49, 24  ;;  %v3887_v36 = vmul.f32 %v4337_v22, %v3878_v21 }
 0xf42   :  { %v3896_v56 = vadd.f32 %v4338_v34, %v3887_v36 }
 0xf44   :  { %3930 = vxpose.xlu1.b32.end [2/2] (short) (narrow) %v3896_v56, 24 }
 0xfb8   :  { %v3913_v18 = vpop.trf.xlu0 }
 0xfb9   :  { %3961 = vst.msk [vmem:[%s6126_s9] sm:$0xff] %vm380_vm5, %v3913_v18 }
 0xfbc   :  { %v3914_v33 = vpop.trf.xlu0 }
 0xfbd   :  { %3962 = vst.msk [vmem:[%s6126_s9 + $0x8] sm:$0xff] %vm380_vm5, %v3914_v33 }
 0xfc0   :  { %v3945_v57 = vpop.trf.xlu1  ;;  %v3915_v7 = vpop.trf.xlu0 }
 0xfc1   :  { %3965 = vst.msk [vmem:[%s6126_s9 + $0x18] sm:$0xff] %vm380_vm5, %v3945_v57 }
 0xfc2   :  { %3964 = vst.msk [vmem:[%s6126_s9 + $0x10] sm:$0x1f] %vm3963_vm7, %v3915_v7 }
 0xfc4   :  { %v3946_v5 = vpop.trf.xlu1 }
 0xfc5   :  { %3966 = vst.msk [vmem:[%s6126_s9 + $0x20] sm:$0xff] %vm380_vm5, %v3946_v5 }
 0xfc8   :  { %v3947_v6 = vpop.trf.xlu1 }
 0xfc9   :  { %3967 = vst.msk [vmem:[%s6126_s9 + $0x28] sm:$0x1f] %vm3963_vm7, %v3947_v6 }

</bundles_post_ra>
